<compile_context>
chip_gen: v5e
topology: v5e:2x2
jax: 0.10.0
libtpu: 0.0.40
codegen_flags: <defaults>
</compile_context>

<pallas_src>
import functools

import jax
import jax.numpy as jnp
import numpy as np
from jax.experimental import pallas as pl
from jax.experimental.pallas import tpu as pltpu

# Set to jnp.bfloat16 on v6e/v7x to feed the 1x1 channel-mix MXU matmul bf16
# operands (f32 accumulate).  Kept f32 here so the 1e-4 test tolerance holds.
MXU_INPUT_DTYPE = jnp.float32

_OFFS5 = (-2, -1, 0, 1, 2)          # (1,5)/(5,1) convs, padding 2
_OFFS7 = (-9, -6, -3, 0, 3, 6, 9)   # (1,7)/(7,1) convs, dilation 3, padding 9


def _lska_kernel(x_ref, m5_ref, m7_ref,
                 w0h_ref, b0h_ref, w0v_ref, b0v_ref,
                 wsh_ref, bsh_ref, wsv_ref, bsv_ref, w1_ref, b1_ref,
                 o_ref, pad_ref, *, H, W, PB):
    C = x_ref.shape[1]
    L = H * W
    f32 = jnp.float32

    # Zero only the scratch borders: they provide the conv zero padding for the
    # vertical (whole-row shift) stages.  The centre is rewritten every stage.
    # Re-zeroed every grid step (cheap) so per-core scratch is always valid
    # even when the batch axis is sharded across cores.
    pad_ref[:, 0:PB] = jnp.zeros((C, PB), f32)
    pad_ref[:, PB + L:PB + L + PB] = jnp.zeros((C, PB), f32)

    def dw_conv(a, w_ref, b_ref, offsets, col_masks):
        """Depthwise conv over the flat (C, L) tile, vectorized over channels.

        col_masks is a (K, L) f32 ref of per-tap column masks for horizontal
        (along-W) stages, or None for vertical (along-H) stages.
        """
        pad_ref[:, PB:PB + L] = a
        acc = None
        for k, o in enumerate(offsets):
            if o == 0:
                tap = a                                 # centre tap stays in regs
            elif col_masks is None:                     # vertical: shift whole rows
                off = PB + o * W
                tap = pad_ref[:, off:off + L]
            else:                                       # horizontal: shift within rows
                tap = pad_ref[:, PB + o:PB + o + L] * col_masks[k:k + 1, :]
            term = w_ref[:, k:k + 1] * tap              # (C,1) lane broadcast
            acc = term if acc is None else acc + term
        return acc + b_ref[...]                         # (C,1) bias, added once

    u = x_ref[0]                                        # (C, L)

    a = dw_conv(u, w0h_ref, b0h_ref, _OFFS5, m5_ref)    # conv0h: (1,5), pad (0,2)
    a = dw_conv(a, w0v_ref, b0v_ref, _OFFS5, None)      # conv0v: (5,1), pad (2,0)
    a = dw_conv(a, wsh_ref, bsh_ref, _OFFS7, m7_ref)    # conv_spatial_h: (1,7), dil 3
    a = dw_conv(a, wsv_ref, bsv_ref, _OFFS7, None)      # conv_spatial_v: (7,1), dil 3

    # 1x1 channel mix on the MXU, then bias and the attention gate u * attn.
    attn = jnp.dot(w1_ref[...].astype(MXU_INPUT_DTYPE),
                   a.astype(MXU_INPUT_DTYPE),
                   preferred_element_type=f32) + b1_ref[...]
    o_ref[0] = x_ref[0] * attn                          # re-read u for the gate


def _make_col_masks(offsets, H, W):
    """f32 (K, H*W) masks: 1 where the flattened tap stays inside its image row."""
    wcol = np.arange(H * W) % W
    rows = [((wcol + o >= 0) & (wcol + o < W)).astype(np.float32) for o in offsets]
    return jnp.asarray(np.stack(rows))


def lska_pallas(x, params):
    N, C, H, W = x.shape
    L = H * W
    # One-sided scratch border: >= 9*W so dilated vertical taps stay in-bounds,
    # rounded to a multiple of 128 so the centre write is lane-aligned.
    PB = ((9 * W + 127) // 128) * 128

    x_flat = x.reshape(N, C, L)                 # free bitcast reshape (NCHW contiguous)
    m5 = _make_col_masks(_OFFS5, H, W)          # (5, L)
    m7 = _make_col_masks(_OFFS7, H, W)          # (7, L)

    data_spec = pl.BlockSpec((1, C, L), lambda n: (n, 0, 0))

    def full(shape):
        return pl.BlockSpec(shape, lambda n: (0,) * len(shape))

    kernel = functools.partial(_lska_kernel, H=H, W=W, PB=PB)

    out = pl.pallas_call(
        kernel,
        out_shape=jax.ShapeDtypeStruct((N, C, L), jnp.float32),
        grid_spec=pltpu.PrefetchScalarGridSpec(
            num_scalar_prefetch=0,
            grid=(N,),
            in_specs=[data_spec,
                      full((5, L)), full((7, L)),
                      full((C, 5)), full((C, 1)),
                      full((C, 5)), full((C, 1)),
                      full((C, 7)), full((C, 1)),
                      full((C, 7)), full((C, 1)),
                      full((C, C)), full((C, 1))],
            out_specs=data_spec,
            scratch_shapes=[pltpu.VMEM((C, L + 2 * PB), jnp.float32)],
        ),
        compiler_params=pltpu.CompilerParams(
            dimension_semantics=("parallel",)),
    )(x_flat, m5, m7,
      params["w0h"].reshape(C, 5), params["b0h"].reshape(C, 1),
      params["w0v"].reshape(C, 5), params["b0v"].reshape(C, 1),
      params["wsh"].reshape(C, 7), params["bsh"].reshape(C, 1),
      params["wsv"].reshape(C, 7), params["bsv"].reshape(C, 1),
      params["w1"].reshape(C, C), params["b1"].reshape(C, 1))
    return out.reshape(N, C, H, W)


def lska_ref(x, p):
    """Pure-JAX reference matching the PyTorch module semantics."""
    C = x.shape[1]

    def dw(y, w, b, pad, dil):
        out = jax.lax.conv_general_dilated(
            y, w, window_strides=(1, 1), padding=pad, rhs_dilation=dil,
            dimension_numbers=("NCHW", "OIHW", "NCHW"), feature_group_count=C)
        return out + b[None, :, None, None]

    a = dw(x, p["w0h"], p["b0h"], [(0, 0), (2, 2)], (1, 1))
    a = dw(a, p["w0v"], p["b0v"], [(2, 2), (0, 0)], (1, 1))
    a = dw(a, p["wsh"], p["bsh"], [(0, 0), (9, 9)], (1, 3))
    a = dw(a, p["wsv"], p["bsv"], [(9, 9), (0, 0)], (3, 1))
    a = jax.lax.conv_general_dilated(
        a, p["w1"], (1, 1), [(0, 0), (0, 0)],
        dimension_numbers=("NCHW", "OIHW", "NCHW")) + p["b1"][None, :, None, None]
    return x * a


if __name__ == "__main__":
    key = jax.random.PRNGKey(0)
    N, C, H, W = 2, 4, 16, 16
    ks = jax.random.split(key, 11)

    x = jax.random.normal(ks[0], (N, C, H, W), jnp.float32)
    # Deterministic synthetic parameters, shapes as in the PyTorch __init__.
    params = {
        "w0h": 0.1 * jax.random.normal(ks[1], (C, 1, 1, 5), jnp.float32),
        "b0h": 0.1 * jax.random.normal(ks[2], (C,), jnp.float32),
        "w0v": 0.1 * jax.random.normal(ks[3], (C, 1, 5, 1), jnp.float32),
        "b0v": 0.1 * jax.random.normal(ks[4], (C,), jnp.float32),
        "wsh": 0.1 * jax.random.normal(ks[5], (C, 1, 1, 7), jnp.float32),
        "bsh": 0.1 * jax.random.normal(ks[6], (C,), jnp.float32),
        "wsv": 0.1 * jax.random.normal(ks[7], (C, 1, 7, 1), jnp.float32),
        "bsv": 0.1 * jax.random.normal(ks[8], (C,), jnp.float32),
        "w1":  0.1 * jax.random.normal(ks[9], (C, C, 1, 1), jnp.float32),
        "b1":  0.1 * jax.random.normal(ks[10], (C,), jnp.float32),
    }

    out = jax.block_until_ready(lska_pallas(x, params))
    ref = jax.block_until_ready(lska_ref(x, params))
    np.testing.assert_allclose(np.asarray(out), np.asarray(ref), rtol=1e-4, atol=1e-4)
    print("KERNEL_OK")
</pallas_src>

<mosaic_0001>
module attributes {stable_mosaic.version = 11 : i64} {
  func.func @_lska_kernel(%arg0: i32, %arg1: memref<1x4x256xf32, #tpu.memory_space<vmem>>, %arg2: memref<5x256xf32, #tpu.memory_space<vmem>>, %arg3: memref<7x256xf32, #tpu.memory_space<vmem>>, %arg4: memref<4x5xf32, #tpu.memory_space<vmem>>, %arg5: memref<4x1xf32, #tpu.memory_space<vmem>>, %arg6: memref<4x5xf32, #tpu.memory_space<vmem>>, %arg7: memref<4x1xf32, #tpu.memory_space<vmem>>, %arg8: memref<4x7xf32, #tpu.memory_space<vmem>>, %arg9: memref<4x1xf32, #tpu.memory_space<vmem>>, %arg10: memref<4x7xf32, #tpu.memory_space<vmem>>, %arg11: memref<4x1xf32, #tpu.memory_space<vmem>>, %arg12: memref<4x4xf32, #tpu.memory_space<vmem>>, %arg13: memref<4x1xf32, #tpu.memory_space<vmem>>, %arg14: memref<1x4x256xf32, #tpu.memory_space<vmem>>, %arg15: memref<4x768xf32, #tpu.memory_space<vmem>>) attributes {dimension_semantics = [#tpu.dimension_semantics<parallel>], iteration_bounds = array<i64: 2>, scalar_prefetch = 0 : i64, scratch_operands = 1 : i64, tpu.core_type = #tpu.core_type<tc>, window_params = [{transform_indices = @transform_0, window_bounds = array<i64: 1, 4, 256>}, {pipeline_mode = #tpu.pipeline_mode<synchronous>, transform_indices = @transform_1, window_bounds = array<i64: 5, 256>}, {pipeline_mode = #tpu.pipeline_mode<synchronous>, transform_indices = @transform_2, window_bounds = array<i64: 7, 256>}, {pipeline_mode = #tpu.pipeline_mode<synchronous>, transform_indices = @transform_3, window_bounds = array<i64: 4, 5>}, {pipeline_mode = #tpu.pipeline_mode<synchronous>, transform_indices = @transform_4, window_bounds = array<i64: 4, 1>}, {pipeline_mode = #tpu.pipeline_mode<synchronous>, transform_indices = @transform_5, window_bounds = array<i64: 4, 5>}, {pipeline_mode = #tpu.pipeline_mode<synchronous>, transform_indices = @transform_6, window_bounds = array<i64: 4, 1>}, {pipeline_mode = #tpu.pipeline_mode<synchronous>, transform_indices = @transform_7, window_bounds = array<i64: 4, 7>}, {pipeline_mode = #tpu.pipeline_mode<synchronous>, transform_indices = @transform_8, window_bounds = array<i64: 4, 1>}, {pipeline_mode = #tpu.pipeline_mode<synchronous>, transform_indices = @transform_9, window_bounds = array<i64: 4, 7>}, {pipeline_mode = #tpu.pipeline_mode<synchronous>, transform_indices = @transform_10, window_bounds = array<i64: 4, 1>}, {pipeline_mode = #tpu.pipeline_mode<synchronous>, transform_indices = @transform_11, window_bounds = array<i64: 4, 4>}, {pipeline_mode = #tpu.pipeline_mode<synchronous>, transform_indices = @transform_12, window_bounds = array<i64: 4, 1>}, {transform_indices = @transform_13, window_bounds = array<i64: 1, 4, 256>}]} {
    %cst = arith.constant 0.000000e+00 : f32
    %0 = vector.broadcast %cst : f32 to vector<4x256xf32>
    %c0 = arith.constant 0 : index
    %c0_0 = arith.constant 0 : index
    %1 = vector.load %arg15[%c0, %c0_0] : memref<4x768xf32, #tpu.memory_space<vmem>>, vector<4x256xf32>
    tpu.vector_store %arg15[%c0, %c0_0], %0 {strides = array<i32>} : memref<4x768xf32, #tpu.memory_space<vmem>>, vector<4x256xf32>,
    %cst_1 = arith.constant 0.000000e+00 : f32
    %2 = vector.broadcast %cst_1 : f32 to vector<4x256xf32>
    %c0_2 = arith.constant 0 : index
    %c512 = arith.constant 512 : index
    %3 = vector.load %arg15[%c0_2, %c512] : memref<4x768xf32, #tpu.memory_space<vmem>>, vector<4x256xf32>
    tpu.vector_store %arg15[%c0_2, %c512], %2 {strides = array<i32>} : memref<4x768xf32, #tpu.memory_space<vmem>>, vector<4x256xf32>,
    %c0_3 = arith.constant 0 : index
    %c0_4 = arith.constant 0 : index
    %c0_5 = arith.constant 0 : index
    %4 = vector.load %arg1[%c0_3, %c0_4, %c0_5] : memref<1x4x256xf32, #tpu.memory_space<vmem>>, vector<1x4x256xf32>
    %5 = vector.shape_cast %4 : vector<1x4x256xf32> to vector<4x256xf32>
    %c0_6 = arith.constant 0 : index
    %c256 = arith.constant 256 : index
    %6 = vector.load %arg15[%c0_6, %c256] : memref<4x768xf32, #tpu.memory_space<vmem>>, vector<4x256xf32>
    tpu.vector_store %arg15[%c0_6, %c256], %5 {strides = array<i32>} : memref<4x768xf32, #tpu.memory_space<vmem>>, vector<4x256xf32>,
    %c0_7 = arith.constant 0 : index
    %c254 = arith.constant 254 : index
    %7 = vector.load %arg15[%c0_7, %c254] : memref<4x768xf32, #tpu.memory_space<vmem>>, vector<4x256xf32>
    %c0_8 = arith.constant 0 : index
    %c0_9 = arith.constant 0 : index
    %8 = vector.load %arg2[%c0_8, %c0_9] : memref<5x256xf32, #tpu.memory_space<vmem>>, vector<1x256xf32>
    %9 = vector.broadcast %8 : vector<1x256xf32> to vector<4x256xf32>
    %10 = arith.mulf %7, %9 : vector<4x256xf32>
    %c0_10 = arith.constant 0 : index
    %c0_11 = arith.constant 0 : index
    %11 = vector.load %arg4[%c0_10, %c0_11] : memref<4x5xf32, #tpu.memory_space<vmem>>, vector<4x1xf32>
    %12 = vector.broadcast %11 : vector<4x1xf32> to vector<4x256xf32>
    %13 = arith.mulf %12, %10 : vector<4x256xf32>
    %c0_12 = arith.constant 0 : index
    %c255 = arith.constant 255 : index
    %14 = vector.load %arg15[%c0_12, %c255] : memref<4x768xf32, #tpu.memory_space<vmem>>, vector<4x256xf32>
    %c1 = arith.constant 1 : index
    %c0_13 = arith.constant 0 : index
    %15 = vector.load %arg2[%c1, %c0_13] : memref<5x256xf32, #tpu.memory_space<vmem>>, vector<1x256xf32>
    %16 = vector.broadcast %15 : vector<1x256xf32> to vector<4x256xf32>
    %17 = arith.mulf %14, %16 : vector<4x256xf32>
    %c0_14 = arith.constant 0 : index
    %c1_15 = arith.constant 1 : index
    %18 = vector.load %arg4[%c0_14, %c1_15] : memref<4x5xf32, #tpu.memory_space<vmem>>, vector<4x1xf32>
    %19 = vector.broadcast %18 : vector<4x1xf32> to vector<4x256xf32>
    %20 = arith.mulf %19, %17 : vector<4x256xf32>
    %21 = arith.addf %13, %20 : vector<4x256xf32>
    %c0_16 = arith.constant 0 : index
    %c2 = arith.constant 2 : index
    %22 = vector.load %arg4[%c0_16, %c2] : memref<4x5xf32, #tpu.memory_space<vmem>>, vector<4x1xf32>
    %23 = vector.broadcast %22 : vector<4x1xf32> to vector<4x256xf32>
    %24 = arith.mulf %23, %5 : vector<4x256xf32>
    %25 = arith.addf %21, %24 : vector<4x256xf32>
    %c0_17 = arith.constant 0 : index
    %c257 = arith.constant 257 : index
    %26 = vector.load %arg15[%c0_17, %c257] : memref<4x768xf32, #tpu.memory_space<vmem>>, vector<4x256xf32>
    %c3 = arith.constant 3 : index
    %c0_18 = arith.constant 0 : index
    %27 = vector.load %arg2[%c3, %c0_18] : memref<5x256xf32, #tpu.memory_space<vmem>>, vector<1x256xf32>
    %28 = vector.broadcast %27 : vector<1x256xf32> to vector<4x256xf32>
    %29 = arith.mulf %26, %28 : vector<4x256xf32>
    %c0_19 = arith.constant 0 : index
    %c3_20 = arith.constant 3 : index
    %30 = vector.load %arg4[%c0_19, %c3_20] : memref<4x5xf32, #tpu.memory_space<vmem>>, vector<4x1xf32>
    %31 = vector.broadcast %30 : vector<4x1xf32> to vector<4x256xf32>
    %32 = arith.mulf %31, %29 : vector<4x256xf32>
    %33 = arith.addf %25, %32 : vector<4x256xf32>
    %c0_21 = arith.constant 0 : index
    %c258 = arith.constant 258 : index
    %34 = vector.load %arg15[%c0_21, %c258] : memref<4x768xf32, #tpu.memory_space<vmem>>, vector<4x256xf32>
    %c4 = arith.constant 4 : index
    %c0_22 = arith.constant 0 : index
    %35 = vector.load %arg2[%c4, %c0_22] : memref<5x256xf32, #tpu.memory_space<vmem>>, vector<1x256xf32>
    %36 = vector.broadcast %35 : vector<1x256xf32> to vector<4x256xf32>
    %37 = arith.mulf %34, %36 : vector<4x256xf32>
    %c0_23 = arith.constant 0 : index
    %c4_24 = arith.constant 4 : index
    %38 = vector.load %arg4[%c0_23, %c4_24] : memref<4x5xf32, #tpu.memory_space<vmem>>, vector<4x1xf32>
    %39 = vector.broadcast %38 : vector<4x1xf32> to vector<4x256xf32>
    %40 = arith.mulf %39, %37 : vector<4x256xf32>
    %41 = arith.addf %33, %40 : vector<4x256xf32>
    %c0_25 = arith.constant 0 : index
    %c0_26 = arith.constant 0 : index
    %42 = vector.load %arg5[%c0_25, %c0_26] : memref<4x1xf32, #tpu.memory_space<vmem>>, vector<4x1xf32>
    %43 = vector.broadcast %42 : vector<4x1xf32> to vector<4x256xf32>
    %44 = arith.addf %41, %43 : vector<4x256xf32>
    %c0_27 = arith.constant 0 : index
    %c256_28 = arith.constant 256 : index
    %45 = vector.load %arg15[%c0_27, %c256_28] : memref<4x768xf32, #tpu.memory_space<vmem>>, vector<4x256xf32>
    tpu.vector_store %arg15[%c0_27, %c256_28], %44 {strides = array<i32>} : memref<4x768xf32, #tpu.memory_space<vmem>>, vector<4x256xf32>,
    %c0_29 = arith.constant 0 : index
    %c224 = arith.constant 224 : index
    %46 = vector.load %arg15[%c0_29, %c224] : memref<4x768xf32, #tpu.memory_space<vmem>>, vector<4x256xf32>
    %c0_30 = arith.constant 0 : index
    %c0_31 = arith.constant 0 : index
    %47 = vector.load %arg6[%c0_30, %c0_31] : memref<4x5xf32, #tpu.memory_space<vmem>>, vector<4x1xf32>
    %48 = vector.broadcast %47 : vector<4x1xf32> to vector<4x256xf32>
    %49 = arith.mulf %48, %46 : vector<4x256xf32>
    %c0_32 = arith.constant 0 : index
    %c240 = arith.constant 240 : index
    %50 = vector.load %arg15[%c0_32, %c240] : memref<4x768xf32, #tpu.memory_space<vmem>>, vector<4x256xf32>
    %c0_33 = arith.constant 0 : index
    %c1_34 = arith.constant 1 : index
    %51 = vector.load %arg6[%c0_33, %c1_34] : memref<4x5xf32, #tpu.memory_space<vmem>>, vector<4x1xf32>
    %52 = vector.broadcast %51 : vector<4x1xf32> to vector<4x256xf32>
    %53 = arith.mulf %52, %50 : vector<4x256xf32>
    %54 = arith.addf %49, %53 : vector<4x256xf32>
    %c0_35 = arith.constant 0 : index
    %c2_36 = arith.constant 2 : index
    %55 = vector.load %arg6[%c0_35, %c2_36] : memref<4x5xf32, #tpu.memory_space<vmem>>, vector<4x1xf32>
    %56 = vector.broadcast %55 : vector<4x1xf32> to vector<4x256xf32>
    %57 = arith.mulf %56, %44 : vector<4x256xf32>
    %58 = arith.addf %54, %57 : vector<4x256xf32>
    %c0_37 = arith.constant 0 : index
    %c272 = arith.constant 272 : index
    %59 = vector.load %arg15[%c0_37, %c272] : memref<4x768xf32, #tpu.memory_space<vmem>>, vector<4x256xf32>
    %c0_38 = arith.constant 0 : index
    %c3_39 = arith.constant 3 : index
    %60 = vector.load %arg6[%c0_38, %c3_39] : memref<4x5xf32, #tpu.memory_space<vmem>>, vector<4x1xf32>
    %61 = vector.broadcast %60 : vector<4x1xf32> to vector<4x256xf32>
    %62 = arith.mulf %61, %59 : vector<4x256xf32>
    %63 = arith.addf %58, %62 : vector<4x256xf32>
    %c0_40 = arith.constant 0 : index
    %c288 = arith.constant 288 : index
    %64 = vector.load %arg15[%c0_40, %c288] : memref<4x768xf32, #tpu.memory_space<vmem>>, vector<4x256xf32>
    %c0_41 = arith.constant 0 : index
    %c4_42 = arith.constant 4 : index
    %65 = vector.load %arg6[%c0_41, %c4_42] : memref<4x5xf32, #tpu.memory_space<vmem>>, vector<4x1xf32>
    %66 = vector.broadcast %65 : vector<4x1xf32> to vector<4x256xf32>
    %67 = arith.mulf %66, %64 : vector<4x256xf32>
    %68 = arith.addf %63, %67 : vector<4x256xf32>
    %c0_43 = arith.constant 0 : index
    %c0_44 = arith.constant 0 : index
    %69 = vector.load %arg7[%c0_43, %c0_44] : memref<4x1xf32, #tpu.memory_space<vmem>>, vector<4x1xf32>
    %70 = vector.broadcast %69 : vector<4x1xf32> to vector<4x256xf32>
    %71 = arith.addf %68, %70 : vector<4x256xf32>
    %c0_45 = arith.constant 0 : index
    %c256_46 = arith.constant 256 : index
    %72 = vector.load %arg15[%c0_45, %c256_46] : memref<4x768xf32, #tpu.memory_space<vmem>>, vector<4x256xf32>
    tpu.vector_store %arg15[%c0_45, %c256_46], %71 {strides = array<i32>} : memref<4x768xf32, #tpu.memory_space<vmem>>, vector<4x256xf32>,
    %c0_47 = arith.constant 0 : index
    %c247 = arith.constant 247 : index
    %73 = vector.load %arg15[%c0_47, %c247] : memref<4x768xf32, #tpu.memory_space<vmem>>, vector<4x256xf32>
    %c0_48 = arith.constant 0 : index
    %c0_49 = arith.constant 0 : index
    %74 = vector.load %arg3[%c0_48, %c0_49] : memref<7x256xf32, #tpu.memory_space<vmem>>, vector<1x256xf32>
    %75 = vector.broadcast %74 : vector<1x256xf32> to vector<4x256xf32>
    %76 = arith.mulf %73, %75 : vector<4x256xf32>
    %c0_50 = arith.constant 0 : index
    %c0_51 = arith.constant 0 : index
    %77 = vector.load %arg8[%c0_50, %c0_51] : memref<4x7xf32, #tpu.memory_space<vmem>>, vector<4x1xf32>
    %78 = vector.broadcast %77 : vector<4x1xf32> to vector<4x256xf32>
    %79 = arith.mulf %78, %76 : vector<4x256xf32>
    %c0_52 = arith.constant 0 : index
    %c250 = arith.constant 250 : index
    %80 = vector.load %arg15[%c0_52, %c250] : memref<4x768xf32, #tpu.memory_space<vmem>>, vector<4x256xf32>
    %c1_53 = arith.constant 1 : index
    %c0_54 = arith.constant 0 : index
    %81 = vector.load %arg3[%c1_53, %c0_54] : memref<7x256xf32, #tpu.memory_space<vmem>>, vector<1x256xf32>
    %82 = vector.broadcast %81 : vector<1x256xf32> to vector<4x256xf32>
    %83 = arith.mulf %80, %82 : vector<4x256xf32>
    %c0_55 = arith.constant 0 : index
    %c1_56 = arith.constant 1 : index
    %84 = vector.load %arg8[%c0_55, %c1_56] : memref<4x7xf32, #tpu.memory_space<vmem>>, vector<4x1xf32>
    %85 = vector.broadcast %84 : vector<4x1xf32> to vector<4x256xf32>
    %86 = arith.mulf %85, %83 : vector<4x256xf32>
    %87 = arith.addf %79, %86 : vector<4x256xf32>
    %c0_57 = arith.constant 0 : index
    %c253 = arith.constant 253 : index
    %88 = vector.load %arg15[%c0_57, %c253] : memref<4x768xf32, #tpu.memory_space<vmem>>, vector<4x256xf32>
    %c2_58 = arith.constant 2 : index
    %c0_59 = arith.constant 0 : index
    %89 = vector.load %arg3[%c2_58, %c0_59] : memref<7x256xf32, #tpu.memory_space<vmem>>, vector<1x256xf32>
    %90 = vector.broadcast %89 : vector<1x256xf32> to vector<4x256xf32>
    %91 = arith.mulf %88, %90 : vector<4x256xf32>
    %c0_60 = arith.constant 0 : index
    %c2_61 = arith.constant 2 : index
    %92 = vector.load %arg8[%c0_60, %c2_61] : memref<4x7xf32, #tpu.memory_space<vmem>>, vector<4x1xf32>
    %93 = vector.broadcast %92 : vector<4x1xf32> to vector<4x256xf32>
    %94 = arith.mulf %93, %91 : vector<4x256xf32>
    %95 = arith.addf %87, %94 : vector<4x256xf32>
    %c0_62 = arith.constant 0 : index
    %c3_63 = arith.constant 3 : index
    %96 = vector.load %arg8[%c0_62, %c3_63] : memref<4x7xf32, #tpu.memory_space<vmem>>, vector<4x1xf32>
    %97 = vector.broadcast %96 : vector<4x1xf32> to vector<4x256xf32>
    %98 = arith.mulf %97, %71 : vector<4x256xf32>
    %99 = arith.addf %95, %98 : vector<4x256xf32>
    %c0_64 = arith.constant 0 : index
    %c259 = arith.constant 259 : index
    %100 = vector.load %arg15[%c0_64, %c259] : memref<4x768xf32, #tpu.memory_space<vmem>>, vector<4x256xf32>
    %c4_65 = arith.constant 4 : index
    %c0_66 = arith.constant 0 : index
    %101 = vector.load %arg3[%c4_65, %c0_66] : memref<7x256xf32, #tpu.memory_space<vmem>>, vector<1x256xf32>
    %102 = vector.broadcast %101 : vector<1x256xf32> to vector<4x256xf32>
    %103 = arith.mulf %100, %102 : vector<4x256xf32>
    %c0_67 = arith.constant 0 : index
    %c4_68 = arith.constant 4 : index
    %104 = vector.load %arg8[%c0_67, %c4_68] : memref<4x7xf32, #tpu.memory_space<vmem>>, vector<4x1xf32>
    %105 = vector.broadcast %104 : vector<4x1xf32> to vector<4x256xf32>
    %106 = arith.mulf %105, %103 : vector<4x256xf32>
    %107 = arith.addf %99, %106 : vector<4x256xf32>
    %c0_69 = arith.constant 0 : index
    %c262 = arith.constant 262 : index
    %108 = vector.load %arg15[%c0_69, %c262] : memref<4x768xf32, #tpu.memory_space<vmem>>, vector<4x256xf32>
    %c5 = arith.constant 5 : index
    %c0_70 = arith.constant 0 : index
    %109 = vector.load %arg3[%c5, %c0_70] : memref<7x256xf32, #tpu.memory_space<vmem>>, vector<1x256xf32>
    %110 = vector.broadcast %109 : vector<1x256xf32> to vector<4x256xf32>
    %111 = arith.mulf %108, %110 : vector<4x256xf32>
    %c0_71 = arith.constant 0 : index
    %c5_72 = arith.constant 5 : index
    %112 = vector.load %arg8[%c0_71, %c5_72] : memref<4x7xf32, #tpu.memory_space<vmem>>, vector<4x1xf32>
    %113 = vector.broadcast %112 : vector<4x1xf32> to vector<4x256xf32>
    %114 = arith.mulf %113, %111 : vector<4x256xf32>
    %115 = arith.addf %107, %114 : vector<4x256xf32>
    %c0_73 = arith.constant 0 : index
    %c265 = arith.constant 265 : index
    %116 = vector.load %arg15[%c0_73, %c265] : memref<4x768xf32, #tpu.memory_space<vmem>>, vector<4x256xf32>
    %c6 = arith.constant 6 : index
    %c0_74 = arith.constant 0 : index
    %117 = vector.load %arg3[%c6, %c0_74] : memref<7x256xf32, #tpu.memory_space<vmem>>, vector<1x256xf32>
    %118 = vector.broadcast %117 : vector<1x256xf32> to vector<4x256xf32>
    %119 = arith.mulf %116, %118 : vector<4x256xf32>
    %c0_75 = arith.constant 0 : index
    %c6_76 = arith.constant 6 : index
    %120 = vector.load %arg8[%c0_75, %c6_76] : memref<4x7xf32, #tpu.memory_space<vmem>>, vector<4x1xf32>
    %121 = vector.broadcast %120 : vector<4x1xf32> to vector<4x256xf32>
    %122 = arith.mulf %121, %119 : vector<4x256xf32>
    %123 = arith.addf %115, %122 : vector<4x256xf32>
    %c0_77 = arith.constant 0 : index
    %c0_78 = arith.constant 0 : index
    %124 = vector.load %arg9[%c0_77, %c0_78] : memref<4x1xf32, #tpu.memory_space<vmem>>, vector<4x1xf32>
    %125 = vector.broadcast %124 : vector<4x1xf32> to vector<4x256xf32>
    %126 = arith.addf %123, %125 : vector<4x256xf32>
    %c0_79 = arith.constant 0 : index
    %c256_80 = arith.constant 256 : index
    %127 = vector.load %arg15[%c0_79, %c256_80] : memref<4x768xf32, #tpu.memory_space<vmem>>, vector<4x256xf32>
    tpu.vector_store %arg15[%c0_79, %c256_80], %126 {strides = array<i32>} : memref<4x768xf32, #tpu.memory_space<vmem>>, vector<4x256xf32>,
    %c0_81 = arith.constant 0 : index
    %c112 = arith.constant 112 : index
    %128 = vector.load %arg15[%c0_81, %c112] : memref<4x768xf32, #tpu.memory_space<vmem>>, vector<4x256xf32>
    %c0_82 = arith.constant 0 : index
    %c0_83 = arith.constant 0 : index
    %129 = vector.load %arg10[%c0_82, %c0_83] : memref<4x7xf32, #tpu.memory_space<vmem>>, vector<4x1xf32>
    %130 = vector.broadcast %129 : vector<4x1xf32> to vector<4x256xf32>
    %131 = arith.mulf %130, %128 : vector<4x256xf32>
    %c0_84 = arith.constant 0 : index
    %c160 = arith.constant 160 : index
    %132 = vector.load %arg15[%c0_84, %c160] : memref<4x768xf32, #tpu.memory_space<vmem>>, vector<4x256xf32>
    %c0_85 = arith.constant 0 : index
    %c1_86 = arith.constant 1 : index
    %133 = vector.load %arg10[%c0_85, %c1_86] : memref<4x7xf32, #tpu.memory_space<vmem>>, vector<4x1xf32>
    %134 = vector.broadcast %133 : vector<4x1xf32> to vector<4x256xf32>
    %135 = arith.mulf %134, %132 : vector<4x256xf32>
    %136 = arith.addf %131, %135 : vector<4x256xf32>
    %c0_87 = arith.constant 0 : index
    %c208 = arith.constant 208 : index
    %137 = vector.load %arg15[%c0_87, %c208] : memref<4x768xf32, #tpu.memory_space<vmem>>, vector<4x256xf32>
    %c0_88 = arith.constant 0 : index
    %c2_89 = arith.constant 2 : index
    %138 = vector.load %arg10[%c0_88, %c2_89] : memref<4x7xf32, #tpu.memory_space<vmem>>, vector<4x1xf32>
    %139 = vector.broadcast %138 : vector<4x1xf32> to vector<4x256xf32>
    %140 = arith.mulf %139, %137 : vector<4x256xf32>
    %141 = arith.addf %136, %140 : vector<4x256xf32>
    %c0_90 = arith.constant 0 : index
    %c3_91 = arith.constant 3 : index
    %142 = vector.load %arg10[%c0_90, %c3_91] : memref<4x7xf32, #tpu.memory_space<vmem>>, vector<4x1xf32>
    %143 = vector.broadcast %142 : vector<4x1xf32> to vector<4x256xf32>
    %144 = arith.mulf %143, %126 : vector<4x256xf32>
    %145 = arith.addf %141, %144 : vector<4x256xf32>
    %c0_92 = arith.constant 0 : index
    %c304 = arith.constant 304 : index
    %146 = vector.load %arg15[%c0_92, %c304] : memref<4x768xf32, #tpu.memory_space<vmem>>, vector<4x256xf32>
    %c0_93 = arith.constant 0 : index
    %c4_94 = arith.constant 4 : index
    %147 = vector.load %arg10[%c0_93, %c4_94] : memref<4x7xf32, #tpu.memory_space<vmem>>, vector<4x1xf32>
    %148 = vector.broadcast %147 : vector<4x1xf32> to vector<4x256xf32>
    %149 = arith.mulf %148, %146 : vector<4x256xf32>
    %150 = arith.addf %145, %149 : vector<4x256xf32>
    %c0_95 = arith.constant 0 : index
    %c352 = arith.constant 352 : index
    %151 = vector.load %arg15[%c0_95, %c352] : memref<4x768xf32, #tpu.memory_space<vmem>>, vector<4x256xf32>
    %c0_96 = arith.constant 0 : index
    %c5_97 = arith.constant 5 : index
    %152 = vector.load %arg10[%c0_96, %c5_97] : memref<4x7xf32, #tpu.memory_space<vmem>>, vector<4x1xf32>
    %153 = vector.broadcast %152 : vector<4x1xf32> to vector<4x256xf32>
    %154 = arith.mulf %153, %151 : vector<4x256xf32>
    %155 = arith.addf %150, %154 : vector<4x256xf32>
    %c0_98 = arith.constant 0 : index
    %c400 = arith.constant 400 : index
    %156 = vector.load %arg15[%c0_98, %c400] : memref<4x768xf32, #tpu.memory_space<vmem>>, vector<4x256xf32>
    %c0_99 = arith.constant 0 : index
    %c6_100 = arith.constant 6 : index
    %157 = vector.load %arg10[%c0_99, %c6_100] : memref<4x7xf32, #tpu.memory_space<vmem>>, vector<4x1xf32>
    %158 = vector.broadcast %157 : vector<4x1xf32> to vector<4x256xf32>
    %159 = arith.mulf %158, %156 : vector<4x256xf32>
    %160 = arith.addf %155, %159 : vector<4x256xf32>
    %c0_101 = arith.constant 0 : index
    %c0_102 = arith.constant 0 : index
    %161 = vector.load %arg11[%c0_101, %c0_102] : memref<4x1xf32, #tpu.memory_space<vmem>>, vector<4x1xf32>
    %162 = vector.broadcast %161 : vector<4x1xf32> to vector<4x256xf32>
    %163 = arith.addf %160, %162 : vector<4x256xf32>
    %c0_103 = arith.constant 0 : index
    %c0_104 = arith.constant 0 : index
    %164 = vector.load %arg12[%c0_103, %c0_104] : memref<4x4xf32, #tpu.memory_space<vmem>>, vector<4x4xf32>
    %cst_105 = arith.constant dense<0.000000e+00> : vector<4x256xf32>
    %165 = tpu.matmul %164, %163, %cst_105 {dimension_numbers = #tpu.dot_dimension_numbers<[1], [0], [0], [1], [0, 0, 1, 1], [], []>} : vector<4x4xf32>, vector<4x256xf32>, vector<4x256xf32> -> vector<4x256xf32>
    %c0_106 = arith.constant 0 : index
    %c0_107 = arith.constant 0 : index
    %166 = vector.load %arg13[%c0_106, %c0_107] : memref<4x1xf32, #tpu.memory_space<vmem>>, vector<4x1xf32>
    %167 = vector.broadcast %166 : vector<4x1xf32> to vector<4x256xf32>
    %168 = arith.addf %165, %167 : vector<4x256xf32>
    %c0_108 = arith.constant 0 : index
    %c0_109 = arith.constant 0 : index
    %c0_110 = arith.constant 0 : index
    %169 = vector.load %arg1[%c0_108, %c0_109, %c0_110] : memref<1x4x256xf32, #tpu.memory_space<vmem>>, vector<1x4x256xf32>
    %170 = vector.shape_cast %169 : vector<1x4x256xf32> to vector<4x256xf32>
    %171 = arith.mulf %170, %168 : vector<4x256xf32>
    %c0_111 = arith.constant 0 : index
    %c0_112 = arith.constant 0 : index
    %c0_113 = arith.constant 0 : index
    %172 = vector.load %arg14[%c0_111, %c0_112, %c0_113] : memref<1x4x256xf32, #tpu.memory_space<vmem>>, vector<1x4x256xf32>
    %173 = vector.shape_cast %172 : vector<1x4x256xf32> to vector<4x256xf32>
    %174 = vector.shape_cast %171 : vector<4x256xf32> to vector<1x4x256xf32>
    tpu.vector_store %arg14[%c0_111, %c0_112, %c0_113], %174 {strides = array<i32>} : memref<1x4x256xf32, #tpu.memory_space<vmem>>, vector<1x4x256xf32>,
    return
  }
  func.func @transform_0(%arg0: i32) -> (i32, i32, i32) {
    %c0_i32 = arith.constant 0 : i32
    %c0_i32_0 = arith.constant 0 : i32
    %c0_i32_1 = arith.constant 0 : i32
    return %arg0, %c0_i32, %c0_i32_0 : i32, i32, i32
  }
  func.func @transform_1(%arg0: i32) -> (i32, i32) {
    %c0_i32 = arith.constant 0 : i32
    %c0_i32_0 = arith.constant 0 : i32
    %c0_i32_1 = arith.constant 0 : i32
    return %c0_i32, %c0_i32_0 : i32, i32
  }
  func.func @transform_2(%arg0: i32) -> (i32, i32) {
    %c0_i32 = arith.constant 0 : i32
    %c0_i32_0 = arith.constant 0 : i32
    %c0_i32_1 = arith.constant 0 : i32
    return %c0_i32, %c0_i32_0 : i32, i32
  }
  func.func @transform_3(%arg0: i32) -> (i32, i32) {
    %c0_i32 = arith.constant 0 : i32
    %c0_i32_0 = arith.constant 0 : i32
    %c0_i32_1 = arith.constant 0 : i32
    return %c0_i32, %c0_i32_0 : i32, i32
  }
  func.func @transform_4(%arg0: i32) -> (i32, i32) {
    %c0_i32 = arith.constant 0 : i32
    %c0_i32_0 = arith.constant 0 : i32
    %c0_i32_1 = arith.constant 0 : i32
    return %c0_i32, %c0_i32_0 : i32, i32
  }
  func.func @transform_5(%arg0: i32) -> (i32, i32) {
    %c0_i32 = arith.constant 0 : i32
    %c0_i32_0 = arith.constant 0 : i32
    %c0_i32_1 = arith.constant 0 : i32
    return %c0_i32, %c0_i32_0 : i32, i32
  }
  func.func @transform_6(%arg0: i32) -> (i32, i32) {
    %c0_i32 = arith.constant 0 : i32
    %c0_i32_0 = arith.constant 0 : i32
    %c0_i32_1 = arith.constant 0 : i32
    return %c0_i32, %c0_i32_0 : i32, i32
  }
  func.func @transform_7(%arg0: i32) -> (i32, i32) {
    %c0_i32 = arith.constant 0 : i32
    %c0_i32_0 = arith.constant 0 : i32
    %c0_i32_1 = arith.constant 0 : i32
    return %c0_i32, %c0_i32_0 : i32, i32
  }
  func.func @transform_8(%arg0: i32) -> (i32, i32) {
    %c0_i32 = arith.constant 0 : i32
    %c0_i32_0 = arith.constant 0 : i32
    %c0_i32_1 = arith.constant 0 : i32
    return %c0_i32, %c0_i32_0 : i32, i32
  }
  func.func @transform_9(%arg0: i32) -> (i32, i32) {
    %c0_i32 = arith.constant 0 : i32
    %c0_i32_0 = arith.constant 0 : i32
    %c0_i32_1 = arith.constant 0 : i32
    return %c0_i32, %c0_i32_0 : i32, i32
  }
  func.func @transform_10(%arg0: i32) -> (i32, i32) {
    %c0_i32 = arith.constant 0 : i32
    %c0_i32_0 = arith.constant 0 : i32
    %c0_i32_1 = arith.constant 0 : i32
    return %c0_i32, %c0_i32_0 : i32, i32
  }
  func.func @transform_11(%arg0: i32) -> (i32, i32) {
    %c0_i32 = arith.constant 0 : i32
    %c0_i32_0 = arith.constant 0 : i32
    %c0_i32_1 = arith.constant 0 : i32
    return %c0_i32, %c0_i32_0 : i32, i32
  }
  func.func @transform_12(%arg0: i32) -> (i32, i32) {
    %c0_i32 = arith.constant 0 : i32
    %c0_i32_0 = arith.constant 0 : i32
    %c0_i32_1 = arith.constant 0 : i32
    return %c0_i32, %c0_i32_0 : i32, i32
  }
  func.func @transform_13(%arg0: i32) -> (i32, i32, i32) {
    %c0_i32 = arith.constant 0 : i32
    %c0_i32_0 = arith.constant 0 : i32
    %c0_i32_1 = arith.constant 0 : i32
    return %arg0, %c0_i32, %c0_i32_0 : i32, i32, i32
  }
}

</mosaic_0001>

<bundles_post_ra>
// kernel: tpu_custom_call.1
= control target key start
LH: loop header
LB: loop body
LE: loop exit
PB: predicated region body
PF: predicated region fallthrough
CT: control target
= control target key end

     0   :  { %s2343_s0 = inlined_call_operand.hbm [shape: f32[2,4,256], index: 0, kind: input, shape index: {}]   ;;  %s2344_s1 = inlined_call_operand.hbm [shape: f32[5,256], index: 1, kind: input, shape index: {}]   ;;  %s2345_s2 = inlined_call_operand.hbm [shape: f32[7,256], index: 2, kind: input, shape index: {}]   ;;  %s2346_s3 = inlined_call_operand.vmem [shape: f32[4,5], index: 3, kind: input, shape index: {}]   ;;  %s2347_s4 = inlined_call_operand.vmem [shape: f32[4,1], index: 4, kind: input, shape index: {}]   ;;  %s2348_s5 = inlined_call_operand.vmem [shape: f32[4,5], index: 5, kind: input, shape index: {}]   ;;  %s2349_s6 = inlined_call_operand.vmem [shape: f32[4,1], index: 6, kind: input, shape index: {}]   ;;  %s2350_s7 = inlined_call_operand.vmem [shape: f32[4,7], index: 7, kind: input, shape index: {}]   ;;  %s2351_s8 = inlined_call_operand.vmem [shape: f32[4,1], index: 8, kind: input, shape index: {}]   ;;  %s2352_s9 = inlined_call_operand.vmem [shape: f32[4,7], index: 9, kind: input, shape index: {}]   ;;  %s2353_s10 = inlined_call_operand.vmem [shape: f32[4,1], index: 10, kind: input, shape index: {}]   ;;  %s2354_s11 = inlined_call_operand.vmem [shape: f32[4,4], index: 11, kind: input, shape index: {}]   ;;  %s2355_s12 = inlined_call_operand.vmem [shape: f32[4,1], index: 12, kind: input, shape index: {}]   ;;  %s2356_s13 = inlined_call_operand.hbm [shape: f32[2,4,256], index: 13, kind: output, shape index: {}]  }
   0x1   :  { %2365 = sst [smem:[#allocation18_spill]] %s2344_s1 }
   0x2   :  { %2366 = sst [smem:[#allocation19_spill]] %s2345_s2 }
   0x3   :  { %18 = vsyncpa [#allocation4], 0 }
   0x4   :  { %20 = vsyncpa [#allocation4 + $0x1], 0 }
   0x5   :  { %21 = vsyncpa [#allocation7], 0 }
   0x6   :  { %22 = vsyncpa [#allocation5], 0 }
   0x7   :  { %24 = vsyncpa [#allocation5 + $0x1], 0  ;;  %s1911_s25 = smov 0   ;;  %s1913_s26 = smov 0  }
   0x8   :  { %s1915_s27 = smov 0   ;;  %s1917_s28 = smov 0  }
   0x9 LB: > { %2367 = sst [smem:[#allocation13_spill]] %s1801_s25  ;;  %s1932_s29 = sadd.s32 4294967295, %s1813_s28   ;;  %s1813_s28 = sphi %s1917_s28, %s2384_s28   ;;  %s1809_s27 = sphi %s1915_s27, %s2386_s27   ;;  %s1805_s26 = sphi %s1913_s26, %s2388_s26   ;;  %s1801_s25 = sphi %s1911_s25, %s2387_s25  }
   0xa   : > { %2368 = sst [smem:[#allocation14_spill]] %s1809_s27  ;;  %s1510_s30 = sadd.s32 4294967294, %s1813_s28  }
   0xb   : > { %p50_p0 = scmp.ne.s32.totalorder %s1805_s26, %s1801_s25  ;;  %p51_p1 = scmp.eq.s32.totalorder %s1932_s29, 0 }
   0xc   : > { %p326_p2 = scmp.eq.s32.totalorder %s1932_s29, 1  ;;  %p332_p3 = scmp.eq.s32.totalorder %s1510_s30, 1 }
   0xd   : > { %p1941_p4 = por %p51_p1, %p50_p0  ;;  %p1511_p5 = scmp.ge.s32.totalorder %s1813_s28, 1 }
   0xe   : > { %p1946_p6 = por %p332_p3, %p50_p0  ;;  %p339_p7 = scmp.lt.s32.totalorder %s1813_s28, 3 }
   0xf   : > { %s2372_s1 = sld [smem:[#allocation18_spill]]  ;;  %s1815_s20 = smov [#allocation6]  }
  0x10   : > { %s2370_s15 = scalar_select %p1946_p6, 1, 0 }
  0x11   : > { %p1954_p8 = pnand %p1511_p5, %p339_p7  ;;  %s353_s21 = sshll.u32 %s1815_s20, 4  ;;  %s354_s21 = int_to_ptr.vmem [resolvable:$true] %s353_s21 }
  0x12   : > { %2371 = sst [smem:[#allocation15_spill]] %s2370_s15  ;;  %s1816_s30 = smov [#allocation8]  }
  0x13   : > { %p1546_p10 = pneg %p1954_p8  ;;  %s2374_s2 = sld [smem:[#allocation19_spill]] }
  0x14   : > { %s365_s16 = sshll.u32 %s1816_s30, 4  ;;  %s1967_s17 = sadd.s32 1, %s1813_s28   ;;  %s366_s16 = int_to_ptr.vmem [resolvable:$true] %s365_s16 }
  0x15   : > { %s351_s18 = sshll.u32 %s2372_s1, 4  ;;  %p1547_p11 = pnand %p1546_p10, %p51_p1  ;;  %s352_s18 = int_to_ptr.hbm [resolvable:$true] %s351_s18 }
  0x16   : > { %2375 = sst [smem:[#allocation16_spill]] %s1967_s17  ;;  %s37_s20 = sadd.s32 1, %s1809_s27 }
  0x17   : > { %1549 = dma.hbm_to_vmem [thread:$0]  (!%p1547_p11), %s352_s18, 256, %s354_s21, [#allocation7]  }
  0x18   : > { %s34_s1 = ssub.s32 %s1813_s28, %s1967_s17  ;;  %p44_p12 = scmp.ne.s32.totalorder %s1809_s27, %s1805_s26 }
  0x19   : > { %s363_s24 = sshll.u32 %s2374_s2, 4  ;;  %p35_p13 = scmp.eq.s32.totalorder %s34_s1, 0  ;;  %s364_s24 = int_to_ptr.hbm [resolvable:$true] %s363_s24 }
  0x1a   : > { %1552 = dma.hbm_to_vmem [thread:$0]  (!%p1547_p11), %s364_s24, 256, %s366_s16, [#allocation7]  }
  0x1b   : > { %p45_p0 = scmp.eq.s32.totalorder %s1813_s28, 0  ;;  %p1977_p3 = por %p326_p2, %p44_p12 }
  0x1c   : > { %p1563_p5 = scmp.lt.s32.totalorder %s1813_s28, 2  ;;  %s406_s18 = sand.u32 1, %s1809_s27  }
  0x1d   : > { %s1983_s23 = scalar_select %p35_p13, %s1809_s27, %s37_s20  }
  0x1e   : > { %p46_p7 = por %p45_p0, %p44_p12  ;;  %s1515_s21 = sshll.u32 %s406_s18, 3 }
  0x1f   : > { %2377 = sst [smem:[#allocation17_spill]] %s1983_s23  ;;  %s1532_s24 = sshll.u32 %s1813_s28, 3 }
  0x20   : > { %s415_s2 = scalar_lea.hbm %s2343_s0, %s1532_s24  ;;  %s410_s17 = scalar_lea.vmem [#allocation3], %s1515_s21 }
  0x21   : > { %s419_s15 = sshll.u32 %s410_s17, 4  ;;  %s417_s1 = sshll.u32 %s415_s2, 4  ;;  %s420_s15 = int_to_ptr.vmem [resolvable:$true] %s419_s15  ;;  %s418_s1 = int_to_ptr.hbm [resolvable:$true] %s417_s1 }
  0x22   : > { %p1990_p2 = pnand %p1563_p5, %p46_p7  ;;  %s407_s20 = scalar_lea.sflag [#allocation4], %s406_s18 }
  0x23   : > { %s1713_s23 = sshra.s32 %s418_s1, 4  ;;  %s1720_s2 = scalar_lea.hbm %s2343_s0, 16  ;;  %s1714_s23 = int_to_ptr.hbm [resolvable:$true] %s1713_s23 }
  0x24   : > { %s1715_s27 = scalar_lea.hbm %s1714_s23, 8  ;;  %p1717_p11 = pneg %p1990_p2 }
  0x25   : > { %p1716_p10 = scmp.ne.s32.totalorder %s1714_s23, %s1715_s27  ;;  %p1721_p0 = scmp.lt.s32.totalorder %s1714_s23, %s2343_s0 }
  0x26   : > { %p1722_p5 = scmp.lt.s32.totalorder %s1720_s2, %s1715_s27 }
  0x27   : > { %p1718_p12 = pnand %p1717_p11, %p1716_p10 }
  0x28   : > { %p1723_p7 = por %p1722_p5, %p1721_p0 }
  0x29   : > { %p1719_p13 = pneg %p1718_p12 }
  0x2b   : > { %p1724_p9 = pnand %p1723_p7, %p1719_p13 }
  0x2d   : > { %1727 = shalt.err (!%p1724_p9)
}
  0x2e   : > { %1556 = dma.hbm_to_vmem [thread:$0]  (!%p1990_p2), %s418_s1, 128, %s420_s15, %s407_s20  }
  0x2f   : > { %428 = sbr.rel (%p1954_p8) target bundleno = 1086 (0x43e), region = 72  ;;  %s2007_s18 = sand.u32 (!%p1954_p8), 1, %s1805_s26  }
  0x30   : > { %s2362_s16 = sshll.u32 (!%p1954_p8), %s2007_s18, 3  ;;  %s431_s24 = scalar_lea.sflag (!%p1954_p8), [#allocation4], %s2007_s18 }
  0x31   : > { %s2013_s27 = scalar_lea.vmem (!%p1954_p8), [#allocation3], %s2362_s16 }
  0x34   : > { %1788 = dma.done.wait (%p1941_p4), %s431_s24, 128  }
  0x35   : > { %1790 = vsyncadd (%p1941_p4), %s431_s24, 4294967168 }
  0x36   : > { %1792 = dma.done.wait (%p51_p1), [#allocation7], 512  }
  0x37   : > { %1794 = vsyncadd (%p51_p1), [#allocation7], 4294966784  ;;  %v1817_v0 = vmov 2   ;;  %v1818_v1 = vmov 0.0   ;;  %vm499_vm0 = vcmask 1043456   ;;  %s1819_s25 = smov 126  }
  0x38   : > { %1627 = vset.pattern.permute.xlu1 %v1817_v0  ;;  %488 = vst [vmem:[#allocation2] sm:$0xff] %v1818_v1  ;;  %v494_v2 = vld [vmem:[#allocation6] ss:$8 sm:$0x3]  ;;  %s1820_s14 = smov 1   ;;  %s1821_s15 = smov 127  }
  0x39   : > { %489 = vst [vmem:[#allocation2 + $0x10] sm:$0xff] %v1818_v1  ;;  %v540_v3 = vld [vmem:[#allocation6 + $0x1] ss:$8 sm:$0x3]  ;;  %v496_v4 = vperm.slane %v494_v2, 0  ;;  %v497_v5 = vperm.slane %v494_v2, 1 }
  0x3a   : > { %v603_v6 = vld [vmem:[#allocation6 + $0x3] ss:$8 sm:$0x3]  ;;  %v648_v7 = vld [vmem:[#allocation6 + $0x4] ss:$8 sm:$0x3] }
  0x3b   : > { %v498_v8 = vrot.slane %v497_v5, 4  ;;  %v543_v9 = vperm.slane %v540_v3, 1  ;;  %v605_v10 = vperm.slane %v603_v6, 0  ;;  %v606_v11 = vperm.slane %v603_v6, 1  ;;  %s1822_s19 = smov 2   ;;  %v2038_v23 = vld [vmem:[%s2013_s27] sm:$0xff] }
  0x3c   : > { %v651_v14 = vperm.slane %v648_v7, 1  ;;  %v542_v15 = vperm.slane %v540_v3, 0  ;;  %v650_v18 = vperm.slane %v648_v7, 0  ;;  %v584_v22 = vld [vmem:[%s2346_s3] sm:$0xf]  ;;  %491 = vst [vmem:[#allocation2 + $0x8] sm:$0xff] %v2038_v23 }
  0x3d   : > { %v500_v12 = vsel %vm499_vm0, %v496_v4, %v498_v8  ;;  %v607_v13 = vrot.slane %v606_v11, 4  ;;  %v544_v16 = vrot.slane %v543_v9, 4  ;;  %v1823_v24 = vmov 0   ;;  %v510_v25 = vld [vmem:[%s2346_s3] sm:$0xf]  ;;  %s1827_s30 = smov 32  }
  0x3e   : > { %501 = vrot.lane.b32.xlu0 %v500_v12, %s1819_s25  ;;  %v652_v19 = vrot.slane %v651_v14, 4  ;;  %1625 = vset.pattern.permute.xlu2 %v1823_v24  ;;  %v1824_v26 = vmov 3   ;;  %v617_v27 = vld [vmem:[%s2346_s3] sm:$0xf]  ;;  %v1825_v28 = vmov 1   ;;  %vm504_vm1 = vcmask 1031168  }
  0x3f   : > { %v608_v17 = vsel %vm499_vm0, %v605_v10, %v607_v13  ;;  %v545_v20 = vsel %vm499_vm0, %v542_v15, %v544_v16  ;;  %513 = vperm.xlu2 %1625, %v510_v25   ;;  %1626 = vset.pattern.permute.xlu0 %v1825_v28  ;;  %v555_v29 = vld [vmem:[%s2346_s3] sm:$0xf]  ;;  %vm549_vm2 = vcmask 1039360   ;;  %vm575_vm3 = vcmask 7168   ;;  %s1828_s24 = smov 16   ;;  %s1833_s2 = smov 6  }
  0x40   : > { %609 = vrot.lane.b32.xlu1 %v608_v17, %s1820_s14  ;;  %v653_v21 = vsel %vm499_vm0, %v650_v18, %v652_v19  ;;  %v601_v48 = vld [vmem:[#allocation2 + $0x10] sm:$0xf]  ;;  %v1826_v55 = vmov 4   ;;  %vm530_vm4 = vcmask 15360   ;;  %v690_v6 = vld [vmem:[%s2347_s4] sm:$0xf] }
  0x41   : > { %v646_v56 = vld [vmem:[#allocation2 + $0x10] sm:$0xf]  ;;  %v662_v8 = vld [vmem:[%s2346_s3] sm:$0xf]  ;;  %s1834_s17 = smov 119   ;;  %s1835_s23 = smov 9  }
  0x42   : > { %v764_v10 = vld [vmem:[%s2348_s5] sm:$0xf]  ;;  %s1836_s21 = smov 3   ;;  %vm755_vm5 = vcmask 130048   ;;  %vm726_vm6 = vcmask 261120   ;;  %vm794_vm7 = vcmask 916480  }
  0x43   : > { %v493_v31 = vld [vmem:[#allocation2 + $0xc] sm:$0xf]  ;;  %v492_v32 = vld [vmem:[#allocation2 + $0x4] sm:$0xff]  ;;  %vm825_vm8 = vcmask 785408   ;;  %vm859_vm9 = vcmask 973824   ;;  %vm904_vm10 = vcmask 998400  }
  0x44   : > { %v538_v38 = vld [vmem:[#allocation2 + $0xc] sm:$0xf]  ;;  %vm951_vm11 = vcmask 1022976   ;;  %vm977_vm12 = vcmask 23552   ;;  %vm930_vm13 = vcmask 48128   ;;  %vm885_vm14 = vcmask 72704  }
  0x45   : > { %s2379_s20 = smov 112   ;;  %vm1223_vm15 = vcmask 392192  }
  0x46   : > { %546 = vrot.lane.b32.xlu0 %v545_v20, %s1821_s15 }
  0x47   : > { %1629 = vset.pattern.permute.xlu2 %v1826_v55 }
  0x48   : > { %654 = vrot.lane.b32.xlu1 %v653_v21, %s1822_s19  ;;  %v706_v21 = vld [vmem:[%s2348_s5] sm:$0xf] }
  0x4e   : > { %558 = vperm.xlu0 %1626, %v555_v29  }
  0x50   : > { %587 = vperm.xlu1 %1627, %v584_v22  }
  0x56   : > { %1631 = vset.pattern.permute.xlu0 %v1823_v24 }
  0x58   : > { %1628 = vset.pattern.permute.xlu1 %v1824_v26 }
  0x59   : > { %620 = vperm.xlu1 %1628, %v617_v27  }
  0x61   : > { %1630 = vset.pattern.permute.xlu1 %v1823_v24 }
  0x99   : > { %v514_v11 = vpop.permute.xlu2 %513 }
  0xb0   : > { %v502_v30 = vpop.permute.xlu0 %501 }
  0xb1   : > { %v503_v33 = vrot.slane %v502_v30, 4 }
  0xb2   : > { %v610_v44 = vpop.permute.xlu1 %609 }
  0xb3   : > { %v505_v34 = vsel %vm504_vm1, %v503_v33, %v502_v30  ;;  %v509_v35 = vmul.f32 %v503_v33, %v493_v31  ;;  %v611_v47 = vrot.slane %v610_v44, 4  ;;  %v735_v31 = vld [vmem:[%s2348_s5] sm:$0xf] }
  0xb4   : > { %v508_v36 = vmul.f32 %v505_v34, %v492_v32 }
  0xb5   : > { %520 = vst [vmem:[#allocation1 + $0x10] ss:$2 sm:$0xff] %v509_v35  ;;  %v616_v49 = vmul.f32 %v611_v47, %v601_v48  ;;  %v612_v57 = vsel %vm575_vm3, %v611_v47, %v610_v44 }
  0xb6   : > { %518 = vst [vmem:[#allocation1] ss:$2 sm:$0xff] %v508_v36  ;;  %v615_v59 = vmul.f32 %v612_v57, %v2038_v23 }
  0xb8   : > { %v547_v37 = vpop.permute.xlu0 %546 }
  0xb9   : > { %v548_v39 = vrot.slane %v547_v37, 4 }
  0xba   : > { %v655_v50 = vpop.permute.xlu1 %654 }
  0xbb   : > { %v550_v40 = vsel %vm549_vm2, %v548_v39, %v547_v37  ;;  %v554_v41 = vmul.f32 %v548_v39, %v538_v38  ;;  %v656_v54 = vrot.slane %v655_v50, 4 }
  0xbc   : > { %v523_v42 = vld.sshfl [vmem:[#allocation1 + $0x10] sm:$0xff pattern:$0x75316420]  ;;  %v553_v43 = vmul.f32 %v550_v40, %v492_v32 }
  0xbd   : > { %v521_v45 = vld.sshfl [vmem:[#allocation1] sm:$0xff pattern:$0x75316420]  ;;  %v522_v46 = vld.sshfl [vmem:[#allocation1 + $0x8] sm:$0xff pattern:$0x75316420]  ;;  %528 = vrot.lane.b32.xlu2 %v523_v42, %s1822_s19  ;;  %v661_v58 = vmul.f32 %v656_v54, %v646_v56  ;;  %v657_v63 = vsel %vm530_vm4, %v656_v54, %v655_v50 }
  0xbe   : > { %563 = vst [vmem:[#allocation1] ss:$2 sm:$0xff] %v553_v43  ;;  %524 = vrot.lane.b32.xlu1 %v521_v45, %s1822_s19  ;;  %v660_v2 = vmul.f32 %v657_v63, %v2038_v23 }
  0xbf   : > { %565 = vst [vmem:[#allocation1 + $0x10] ss:$2 sm:$0xff] %v554_v41 }
  0xc0   : > { %v559_v16 = vpop.permute.xlu0 %558 }
  0xc2   : > { %v588_v13 = vpop.permute.xlu1 %587 }
  0xc5   : > { %v566_v51 = vld.sshfl [vmem:[#allocation1] sm:$0xff pattern:$0x75316420]  ;;  %v567_v52 = vld.sshfl [vmem:[#allocation1 + $0x8] sm:$0xff pattern:$0x75316420]  ;;  %526 = vrot.lane.b32.xlu2 %v522_v46, %s1822_s19 }
  0xc6   : > { %v568_v53 = vld.sshfl [vmem:[#allocation1 + $0x10] sm:$0xff pattern:$0x75316420]  ;;  %591 = vst [vmem:[#allocation1] ss:$2 sm:$0xff] %v2038_v23  ;;  %571 = vrot.lane.b32.xlu0 %v567_v52, %s1820_s14  ;;  %s2363_s19 = smov 112  }
  0xc7   : > { %627 = vst [vmem:[#allocation1 + $0x10] ss:$2 sm:$0xff] %v616_v49  ;;  %573 = vrot.lane.b32.xlu1 %v568_v53, %s1820_s14 }
  0xcb   : > { %v621_v15 = vpop.permute.xlu1 %620 }
  0xcd   : > { %v2066_v60 = vld.sshfl [vmem:[#allocation1] sm:$0xff pattern:$0x75316420]  ;;  %v593_v61 = vld.sshfl [vmem:[#allocation1 + $0x8] sm:$0xff pattern:$0x75316420]  ;;  %569 = vrot.lane.b32.xlu2 %v566_v51, %s1820_s14 }
  0xce   : > { %625 = vst [vmem:[#allocation1] ss:$2 sm:$0xff] %v615_v59  ;;  %v630_v62 = vld.sshfl [vmem:[#allocation1 + $0x10] sm:$0xff pattern:$0x75316420]  ;;  %v597_v39 = vmul.f32 %v593_v61, %v588_v13  ;;  %v596_v48 = vmul.f32 %v2066_v60, %v588_v13  ;;  %s1830_s14 = smov 96  }
  0xcf   : > { %672 = vst [vmem:[#allocation1 + $0x10] ss:$2 sm:$0xff] %v661_v58  ;;  %635 = vrot.lane.b32.xlu0 %v630_v62, %s1821_s15  ;;  %v804_v13 = vld [vmem:[#allocation2 + $0x10] sm:$0xf] }
  0xd5   : > { %v628_v3 = vld.sshfl [vmem:[#allocation1] sm:$0xff pattern:$0x75316420]  ;;  %v629_v4 = vld.sshfl [vmem:[#allocation1 + $0x8] sm:$0xff pattern:$0x75316420] }
  0xd6   : > { %670 = vst [vmem:[#allocation1] ss:$2 sm:$0xff] %v660_v2  ;;  %v675_v5 = vld.sshfl [vmem:[#allocation1 + $0x10] sm:$0xff pattern:$0x75316420]  ;;  %633 = vrot.lane.b32.xlu2 %v629_v4, %s1821_s15 }
  0xd7   : > { %680 = vrot.lane.b32.xlu1 %v675_v5, %s1819_s25 }
  0xdd   : > { %v674_v7 = vld.sshfl [vmem:[#allocation1 + $0x8] sm:$0xff pattern:$0x75316420]  ;;  %v673_v9 = vld.sshfl [vmem:[#allocation1] sm:$0xff pattern:$0x75316420] }
  0xde   : > { %631 = vrot.lane.b32.xlu2 %v628_v3, %s1821_s15  ;;  %678 = vrot.lane.b32.xlu0 %v674_v7, %s1819_s25  ;;  %s1832_s15 = smov 125  }
  0xdf   : > { %693 = vperm.xlu1 %1630, %v690_v6  }
  0xe6   : > { %676 = vrot.lane.b32.xlu0 %v673_v9, %s1819_s25  ;;  %665 = vperm.xlu2 %1629, %v662_v8   ;;  %v775_v9 = vld [vmem:[#allocation2 + $0x10] sm:$0xf]  ;;  %s1831_s25 = smov 122  }
  0xe7   : > { %1632 = vset.pattern.permute.xlu1 %v1825_v28 }
  0xe8   : > { %738 = vperm.xlu1 %1632, %v735_v31  }
  0xee   : > { %1633 = vset.pattern.permute.xlu2 %v1817_v0  ;;  %709 = vperm.xlu0 %1631, %v706_v21  }
  0xef   : > { %767 = vperm.xlu2 %1633, %v764_v10  }
  0xf0   : > { %1651 = vset.pattern.permute.xlu1 %v1823_v24 }
  0xf6   : > { %1635 = vset.pattern.permute.xlu0 %v1826_v55 }
  0xf7   : > { %1634 = vset.pattern.permute.xlu2 %v1824_v26 }
  0xf8   : > { %777 = vperm.xlu2 %1634, %v764_v10  }
 0x100   : > { %1636 = vset.pattern.permute.xlu2 %v1823_v24 }
 0x117   : > { %v529_v12 = vpop.permute.xlu2 %528 }
 0x11f   : > { %v527_v14 = vpop.permute.xlu2 %526 }
 0x120   : > { %v532_v27 = vsel %vm530_vm4, %v527_v14, %v529_v12 }
 0x121   : > { %v536_v33 = vmul.f32 %v532_v27, %v514_v11 }
 0x127   : > { %v570_v17 = vpop.permute.xlu2 %569 }
 0x130   : > { %v525_v18 = vpop.permute.xlu1 %524  ;;  %v634_v20 = vpop.permute.xlu2 %633 }
 0x131   : > { %v531_v34 = vsel %vm530_vm4, %v525_v18, %v527_v14  ;;  %v895_v18 = vld [vmem:[#allocation8 + $0x1] ss:$8 sm:$0x3] }
 0x132   : > { %v535_v40 = vmul.f32 %v531_v34, %v514_v11  ;;  %v898_v21 = vperm.slane %v895_v18, 1  ;;  %v897_v27 = vperm.slane %v895_v18, 0  ;;  %v1087_v34 = vld [vmem:[#allocation8 + $0x6] ss:$8 sm:$0x3] }
 0x133   : > { %v1056_v18 = vld [vmem:[%s2350_s7] sm:$0xf] }
 0x138   : > { %v572_v19 = vpop.permute.xlu0 %571  ;;  %v632_v29 = vpop.permute.xlu2 %631 }
 0x139   : > { %v574_v22 = vpop.permute.xlu1 %573  ;;  %v576_v32 = vsel %vm575_vm3, %v570_v17, %v572_v19  ;;  %v637_v50 = vsel %vm549_vm2, %v632_v29, %v634_v20  ;;  %v899_v29 = vrot.slane %v898_v21, 4 }
 0x13a   : > { %v577_v23 = vsel %vm575_vm3, %v572_v19, %v574_v22  ;;  %v580_v37 = vmul.f32 %v576_v32, %v559_v16  ;;  %v641_v54 = vmul.f32 %v637_v50, %v621_v15  ;;  %v942_v19 = vld [vmem:[#allocation8 + $0x2] ss:$8 sm:$0x3]  ;;  %v1042_v32 = vld [vmem:[#allocation8 + $0x5] ss:$8 sm:$0x3] }
 0x13b   : > { %v581_v30 = vmul.f32 %v577_v23, %v559_v16  ;;  %v805_v22 = vld [vmem:[%s2348_s5] sm:$0xf]  ;;  %v945_v23 = vperm.slane %v942_v19, 1 }
 0x13c   : > { %v582_v45 = vadd.f32 %v580_v37, %v535_v40 }
 0x13d   : > { %v583_v38 = vadd.f32 %v581_v30, %v536_v33  ;;  %v944_v30 = vperm.slane %v942_v19, 0  ;;  %v946_v31 = vrot.slane %v945_v23, 4  ;;  %v850_v33 = vld [vmem:[#allocation8] ss:$8 sm:$0x3] }
 0x13e   : > { %v598_v51 = vadd.f32 %v596_v48, %v582_v45  ;;  %v1089_v45 = vperm.slane %v1087_v34, 0 }
 0x13f   : > { %v599_v46 = vadd.f32 %v597_v39, %v583_v38  ;;  %v947_v37 = vsel %vm499_vm0, %v944_v30, %v946_v31  ;;  %v853_v38 = vperm.slane %v850_v33, 1  ;;  %v1090_v39 = vperm.slane %v1087_v34, 1 }
 0x140   : > { %v666_v43 = vpop.permute.xlu2 %665  ;;  %v643_v58 = vadd.f32 %v641_v54, %v598_v51  ;;  %v865_v54 = vld [vmem:[%s2350_s7] sm:$0xf] }
 0x141   : > { %v636_v25 = vpop.permute.xlu0 %635 }
 0x142   : > { %v638_v35 = vsel %vm549_vm2, %v634_v20, %v636_v25  ;;  %v834_v20 = vld [vmem:[%s2349_s6] sm:$0xf]  ;;  %vm1346_vm2 = vcmask 31744  }
 0x143   : > { %v642_v41 = vmul.f32 %v638_v35, %v621_v15  ;;  %v900_v35 = vsel %vm499_vm0, %v897_v27, %v899_v29 }
 0x145   : > { %v644_v49 = vadd.f32 %v642_v41, %v599_v46  ;;  %v1044_v41 = vperm.slane %v1042_v32, 0  ;;  %v1091_v46 = vrot.slane %v1090_v39, 4 }
 0x147   : > { %v1092_v50 = vsel %vm499_vm0, %v1089_v45, %v1091_v46 }
 0x149   : > { %v681_v36 = vpop.permute.xlu1 %680 }
 0x150   : > { %v679_v42 = vpop.permute.xlu0 %678 }
 0x151   : > { %v683_v44 = vsel %vm504_vm1, %v679_v42, %v681_v36  ;;  %v694_v53 = vpop.permute.xlu1 %693  ;;  %v1045_v36 = vperm.slane %v1042_v32, 1 }
 0x152   : > { %v687_v47 = vmul.f32 %v683_v44, %v666_v43  ;;  %v854_v44 = vrot.slane %v853_v38, 4 }
 0x154   : > { %v689_v52 = vadd.f32 %v687_v47, %v644_v49  ;;  %v999_v47 = vld [vmem:[#allocation8 + $0x4] ss:$8 sm:$0x3] }
 0x155   : > { %v1002_v51 = vperm.slane %v999_v47, 1 }
 0x156   : > { %v2107_v59 = vadd.f32 %v694_v53, %v689_v52  ;;  %v1001_v52 = vperm.slane %v999_v47, 0 }
 0x158   : > { %v677_v56 = vpop.permute.xlu0 %676  ;;  %v700_v63 = vrot.slane %v2107_v59, 4 }
 0x159   : > { %v682_v57 = vsel %vm504_vm1, %v677_v56, %v679_v42  ;;  %v1046_v42 = vrot.slane %v1045_v36, 4  ;;  %vm1262_vm1 = vcmask 654336  }
 0x15a   : > { %v686_v61 = vmul.f32 %v682_v57, %v666_v43  ;;  %v852_v43 = vperm.slane %v850_v33, 0  ;;  %v986_v57 = vld [vmem:[%s2350_s7] sm:$0xf] }
 0x15b   : > { %v1047_v48 = vsel %vm499_vm0, %v1044_v41, %v1046_v42 }
 0x15c   : > { %v688_v62 = vadd.f32 %v686_v61, %v643_v58  ;;  %v855_v49 = vsel %vm499_vm0, %v852_v43, %v854_v44  ;;  %v768_v58 = vpop.permute.xlu2 %767 }
 0x15e   : > { %v2110_v2 = vadd.f32 %v694_v53, %v688_v62  ;;  %v1003_v53 = vrot.slane %v1002_v51, 4  ;;  %v739_v62 = vpop.permute.xlu1 %738 }
 0x160   : > { %v701_v60 = vsel %vm499_vm0, %v2110_v2, %v700_v63  ;;  %v1004_v56 = vsel %vm499_vm0, %v1001_v52, %v1003_v53  ;;  %v710_v63 = vpop.permute.xlu0 %709 }
 0x161   : > { %703 = vst [vmem:[#allocation2 + $0x8] sm:$0xff] %v701_v60 }
 0x164   : > { %v778_v61 = vpop.permute.xlu2 %777 }
 0x168   : > { %v704_v3 = vld [vmem:[#allocation2 + $0x4] sm:$0xff]  ;;  %v705_v4 = vld [vmem:[#allocation2 + $0xc] sm:$0xf] }
 0x169   : > { %716 = vst [vmem:[#allocation1 + $0x10] ss:$2 sm:$0xff] %v705_v4  ;;  %v734_v5 = vld [vmem:[#allocation2 + $0xc] sm:$0xf] }
 0x16a   : > { %714 = vst [vmem:[#allocation1] ss:$2 sm:$0xff] %v704_v3 }
 0x170   : > { %v719_v6 = vld.sshfl [vmem:[#allocation1 + $0x10] sm:$0xff pattern:$0x75316420] }
 0x171   : > { %724 = vrot.lane.b32.xlu0 %v719_v6, %s1827_s30  ;;  %745 = vst [vmem:[#allocation1 + $0x10] ss:$2 sm:$0xff] %v734_v5  ;;  %v718_v7 = vld.sshfl [vmem:[#allocation1 + $0x8] sm:$0xff pattern:$0x75316420] }
 0x172   : > { %722 = vrot.lane.b32.xlu2 %v718_v7, %s1827_s30  ;;  %v717_v8 = vld.sshfl [vmem:[#allocation1] sm:$0xff pattern:$0x75316420] }
 0x173   : > { %743 = vst [vmem:[#allocation1] ss:$2 sm:$0xff] %v704_v3 }
 0x178   : > { %v748_v10 = vld.sshfl [vmem:[#allocation1 + $0x10] sm:$0xff pattern:$0x75316420] }
 0x179   : > { %784 = vst [vmem:[#allocation1 + $0x10] ss:$2 sm:$0xff] %v775_v9 }
 0x17a   : > { %720 = vrot.lane.b32.xlu2 %v717_v8, %s1827_s30  ;;  %v747_v11 = vld.sshfl [vmem:[#allocation1 + $0x8] sm:$0xff pattern:$0x75316420]  ;;  %v746_v12 = vld.sshfl [vmem:[#allocation1] sm:$0xff pattern:$0x75316420] }
 0x17b   : > { %751 = vrot.lane.b32.xlu1 %v747_v11, %s1828_s24  ;;  %782 = vst [vmem:[#allocation1] ss:$2 sm:$0xff] %v701_v60  ;;  %v910_v8 = vld [vmem:[%s2350_s7] sm:$0xf] }
 0x180   : > { %v787_v14 = vld.sshfl [vmem:[#allocation1 + $0x10] sm:$0xff pattern:$0x75316420] }
 0x181   : > { %815 = vst [vmem:[#allocation1 + $0x10] ss:$2 sm:$0xff] %v804_v13 }
 0x182   : > { %753 = vrot.lane.b32.xlu2 %v748_v10, %s1828_s24  ;;  %v786_v15 = vld.sshfl [vmem:[#allocation1 + $0x8] sm:$0xff pattern:$0x75316420]  ;;  %v785_v16 = vld.sshfl [vmem:[#allocation1] sm:$0xff pattern:$0x75316420] }
 0x183   : > { %749 = vrot.lane.b32.xlu1 %v746_v12, %s1828_s24  ;;  %790 = vrot.lane.b32.xlu0 %v786_v15, %s2363_s19  ;;  %813 = vst [vmem:[#allocation1] ss:$2 sm:$0xff] %v701_v60  ;;  %v957_v15 = vld [vmem:[%s2350_s7] sm:$0xf] }
 0x188   : > { %v818_v17 = vld.sshfl [vmem:[#allocation1 + $0x10] sm:$0xff pattern:$0x75316420] }
 0x18a   : > { %823 = vrot.lane.b32.xlu2 %v818_v17, %s1830_s14  ;;  %v817_v25 = vld.sshfl [vmem:[#allocation1 + $0x8] sm:$0xff pattern:$0x75316420]  ;;  %v816_v40 = vld.sshfl [vmem:[#allocation1] sm:$0xff pattern:$0x75316420] }
 0x18b   : > { %792 = vrot.lane.b32.xlu1 %v787_v14, %s2363_s19  ;;  %788 = vrot.lane.b32.xlu0 %v785_v16, %s2363_s19  ;;  %v1837_v17 = vmov 5   ;;  %s1839_s19 = smov 48  }
 0x192   : > { %837 = vperm.xlu2 %1636, %v834_v20  }
 0x193   : > { %821 = vrot.lane.b32.xlu1 %v817_v25, %s1830_s14  ;;  %808 = vperm.xlu0 %1635, %v805_v22   ;;  %v771_v25 = vmul.f32 %v768_v58, %v2107_v59  ;;  %v770_v59 = vmul.f32 %v768_v58, %v2110_v2 }
 0x19a   : > { %901 = vrot.lane.b32.xlu2 %v900_v35, %s1831_s25 }
 0x19b   : > { %819 = vrot.lane.b32.xlu1 %v816_v40, %s1830_s14  ;;  %948 = vrot.lane.b32.xlu0 %v947_v37, %s1832_s15 }
 0x19c   : > { %1637 = vset.pattern.permute.xlu0 %v1825_v28 }
 0x1a2   : > { %1048 = vrot.lane.b32.xlu2 %v1047_v48, %s1833_s2 }
 0x1a3   : > { %856 = vrot.lane.b32.xlu1 %v855_v49, %s1834_s17  ;;  %1093 = vrot.lane.b32.xlu0 %v1092_v50, %s1835_s23 }
 0x1aa   : > { %868 = vperm.xlu2 %1636, %v865_v54  }
 0x1ab   : > { %1005 = vrot.lane.b32.xlu1 %v1004_v56, %s1836_s21  ;;  %913 = vperm.xlu0 %1637, %v910_v8  }
 0x1b2   : > { %1639 = vset.pattern.permute.xlu2 %v1824_v26 }
 0x1b3   : > { %989 = vperm.xlu2 %1639, %v986_v57   ;;  %1638 = vset.pattern.permute.xlu0 %v1817_v0 }
 0x1b4   : > { %960 = vperm.xlu0 %1638, %v957_v15  }
 0x1bb   : > { %1641 = vset.pattern.permute.xlu2 %v1837_v17 }
 0x1bc   : > { %1059 = vperm.xlu2 %1641, %v1056_v18   ;;  %1640 = vset.pattern.permute.xlu0 %v1826_v55 }
 0x1bd   : > { %1014 = vperm.xlu0 %1640, %v986_v57  }
 0x1c4   : > { %1643 = vset.pattern.permute.xlu2 %v1823_v24 }
 0x1cc   : > { %v723_v60 = vpop.permute.xlu2 %722 }
 0x1d4   : > { %v721_v5 = vpop.permute.xlu2 %720 }
 0x1d5   : > { %v727_v22 = vsel %vm726_vm6, %v721_v5, %v723_v60 }
 0x1d6   : > { %v731_v33 = vmul.f32 %v727_v22, %v710_v63 }
 0x1dc   : > { %v754_v9 = vpop.permute.xlu2 %753 }
 0x1e3   : > { %v725_v3 = vpop.permute.xlu0 %724 }
 0x1e4   : > { %v728_v13 = vsel %vm726_vm6, %v723_v60, %v725_v3  ;;  %v824_v23 = vpop.permute.xlu2 %823 }
 0x1e5   : > { %v732_v16 = vmul.f32 %v728_v13, %v710_v63 }
 0x1ec   : > { %v838_v43 = vpop.permute.xlu2 %837 }
 0x1ed   : > { %v752_v4 = vpop.permute.xlu1 %751 }
 0x1ee   : > { %v757_v10 = vsel %vm755_vm5, %v752_v4, %v754_v9 }
 0x1ef   : > { %v761_v14 = vmul.f32 %v757_v10, %v739_v62 }
 0x1f1   : > { %v763_v21 = vadd.f32 %v761_v14, %v732_v16  ;;  %v997_v16 = vld [vmem:[#allocation2 + $0x10] sm:$0xf] }
 0x1f3   : > { %v773_v34 = vadd.f32 %v771_v25, %v763_v21 }
 0x1f5   : > { %v750_v6 = vpop.permute.xlu1 %749  ;;  %v791_v7 = vpop.permute.xlu0 %790 }
 0x1f6   : > { %v756_v19 = vsel %vm755_vm5, %v750_v6, %v752_v4 }
 0x1f7   : > { %v760_v27 = vmul.f32 %v756_v19, %v739_v62 }
 0x1f9   : > { %v762_v37 = vadd.f32 %v760_v27, %v731_v33  ;;  %v1040_v27 = vld [vmem:[#allocation2 + $0x10] sm:$0xf] }
 0x1fb   : > { %v772_v41 = vadd.f32 %v770_v59, %v762_v37 }
 0x1fd   : > { %v793_v11 = vpop.permute.xlu1 %792  ;;  %v789_v12 = vpop.permute.xlu0 %788 }
 0x1fe   : > { %v796_v20 = vsel %vm794_vm7, %v791_v7, %v793_v11  ;;  %v795_v36 = vsel %vm794_vm7, %v789_v12, %v791_v7 }
 0x1ff   : > { %v800_v29 = vmul.f32 %v796_v20, %v778_v61  ;;  %v799_v39 = vmul.f32 %v795_v36, %v778_v61  ;;  %v902_v61 = vpop.permute.xlu2 %901 }
 0x200   : > { %v903_v62 = vrot.slane %v902_v61, 4 }
 0x201   : > { %v802_v38 = vadd.f32 %v800_v29, %v773_v34  ;;  %v801_v45 = vadd.f32 %v799_v39, %v772_v41  ;;  %v1838_v41 = vmov 6  }
 0x202   : > { %v905_v60 = vsel %vm904_vm10, %v903_v62, %v902_v61  ;;  %1642 = vset.pattern.permute.xlu0 %v1838_v41 }
 0x205   : > { %v822_v30 = vpop.permute.xlu1 %821  ;;  %v809_v31 = vpop.permute.xlu0 %808 }
 0x206   : > { %v827_v32 = vsel %vm825_vm8, %v822_v30, %v824_v23 }
 0x207   : > { %v831_v35 = vmul.f32 %v827_v32, %v809_v31  ;;  %v1049_v23 = vpop.permute.xlu2 %1048 }
 0x208   : > { %v1050_v29 = vrot.slane %v1049_v23, 4 }
 0x209   : > { %v833_v40 = vadd.f32 %v831_v35, %v802_v38  ;;  %v1085_v38 = vld [vmem:[#allocation2 + $0x10] sm:$0xf] }
 0x20a   : > { %v1055_v33 = vmul.f32 %v1050_v29, %v1040_v27  ;;  %v1051_v34 = vsel %vm930_vm13, %v1050_v29, %v1049_v23 }
 0x20b   : > { %v2175_v47 = vadd.f32 %v838_v43, %v833_v40 }
 0x20d   : > { %v820_v42 = vpop.permute.xlu1 %819  ;;  %v844_v50 = vrot.slane %v2175_v47, 4  ;;  %v949_v6 = vpop.permute.xlu0 %948 }
 0x20e   : > { %v826_v44 = vsel %vm825_vm8, %v820_v42, %v822_v30  ;;  %v950_v8 = vrot.slane %v949_v6, 4 }
 0x20f   : > { %v830_v46 = vmul.f32 %v826_v44, %v809_v31 }
 0x210   : > { %v952_v11 = vsel %vm951_vm11, %v950_v8, %v949_v6 }
 0x211   : > { %v832_v48 = vadd.f32 %v830_v46, %v801_v45 }
 0x213   : > { %v2177_v49 = vadd.f32 %v838_v43, %v832_v48 }
 0x215   : > { %v2182_v51 = vsel %vm499_vm0, %v2177_v49, %v844_v50  ;;  %v857_v2 = vpop.permute.xlu1 %856  ;;  %v1094_v35 = vpop.permute.xlu0 %1093 }
 0x216   : > { %847 = vst [vmem:[#allocation2 + $0x8] sm:$0xff] %v2182_v51  ;;  %v858_v52 = vrot.slane %v857_v2, 4  ;;  %v1054_v37 = vmul.f32 %v1051_v34, %v2182_v51  ;;  %v1095_v59 = vrot.slane %v1094_v35, 4 }
 0x218   : > { %v860_v56 = vsel %vm859_vm9, %v858_v52, %v857_v2  ;;  %v1100_v42 = vmul.f32 %v1095_v59, %v1085_v38  ;;  %v1096_v43 = vsel %vm885_vm14, %v1095_v59, %v1094_v35  ;;  %v1101_v2 = vld [vmem:[%s2350_s7] sm:$0xf] }
 0x219   : > { %v1099_v45 = vmul.f32 %v1096_v43, %v2182_v51 }
 0x21d   : > { %v892_v53 = vld [vmem:[#allocation2 + $0x4] sm:$0xff]  ;;  %v849_v54 = vld [vmem:[#allocation2 + $0xc] sm:$0xf]  ;;  %v1006_v12 = vpop.permute.xlu1 %1005 }
 0x21e   : > { %v863_v57 = vmul.f32 %v892_v53, %v860_v56  ;;  %v864_v58 = vmul.f32 %v858_v52, %v849_v54  ;;  %v893_v63 = vld [vmem:[#allocation2 + $0xc] sm:$0xf]  ;;  %v908_v5 = vmul.f32 %v905_v60, %v892_v53  ;;  %v955_v15 = vmul.f32 %v952_v11, %v892_v53  ;;  %v1145_v54 = vld [vmem:[%s2352_s9] sm:$0xf] }
 0x21f   : > { %v909_v3 = vmul.f32 %v903_v62, %v893_v63  ;;  %v940_v10 = vld [vmem:[#allocation2 + $0xc] sm:$0xf]  ;;  %v1007_v18 = vrot.slane %v1006_v12, 4 }
 0x220   : > { %875 = vst [vmem:[#allocation1 + $0x10] ss:$2 sm:$0xff] %v864_v58  ;;  %v956_v13 = vmul.f32 %v950_v8, %v940_v10 }
 0x221   : > { %873 = vst [vmem:[#allocation1] ss:$2 sm:$0xff] %v863_v57  ;;  %v1012_v21 = vmul.f32 %v1007_v18, %v997_v16  ;;  %v1008_v22 = vsel %vm977_vm12, %v1007_v18, %v1006_v12  ;;  %v869_v57 = vpop.permute.xlu2 %868 }
 0x222   : > { %v1011_v30 = vmul.f32 %v1008_v22, %v2182_v51  ;;  %v1129_v51 = vld [vmem:[%s2351_s8] sm:$0xf] }
 0x227   : > { %v878_v4 = vld.sshfl [vmem:[#allocation1 + $0x10] sm:$0xff pattern:$0x75316420] }
 0x228   : > { %883 = vrot.lane.b32.xlu2 %v878_v4, %s1835_s23  ;;  %920 = vst [vmem:[#allocation1 + $0x10] ss:$2 sm:$0xff] %v909_v3  ;;  %v877_v7 = vld.sshfl [vmem:[#allocation1 + $0x8] sm:$0xff pattern:$0x75316420] }
 0x229   : > { %881 = vrot.lane.b32.xlu1 %v877_v7, %s1835_s23  ;;  %v876_v9 = vld.sshfl [vmem:[#allocation1] sm:$0xff pattern:$0x75316420]  ;;  %v990_v58 = vpop.permute.xlu2 %989 }
 0x22a   : > { %918 = vst [vmem:[#allocation1] ss:$2 sm:$0xff] %v908_v5  ;;  %v993_v38 = vmul.f32 %v990_v58, %v2175_v47 }
 0x22f   : > { %v923_v14 = vld.sshfl [vmem:[#allocation1 + $0x10] sm:$0xff pattern:$0x75316420] }
 0x230   : > { %967 = vst [vmem:[#allocation1 + $0x10] ss:$2 sm:$0xff] %v956_v13 }
 0x231   : > { %879 = vrot.lane.b32.xlu1 %v876_v9, %s1835_s23  ;;  %v922_v19 = vld.sshfl [vmem:[#allocation1 + $0x8] sm:$0xff pattern:$0x75316420]  ;;  %v921_v20 = vld.sshfl [vmem:[#allocation1] sm:$0xff pattern:$0x75316420]  ;;  %v2231_v62 = vpop.permute.xlu2 %1059 }
 0x232   : > { %926 = vrot.lane.b32.xlu0 %v922_v19, %s1833_s2  ;;  %924 = vrot.lane.b32.xlu2 %v921_v20, %s1833_s2  ;;  %965 = vst [vmem:[#allocation1] ss:$2 sm:$0xff] %v955_v15  ;;  %v1173_v9 = vld [vmem:[%s2352_s9] sm:$0xf] }
 0x237   : > { %v970_v25 = vld.sshfl [vmem:[#allocation1 + $0x10] sm:$0xff pattern:$0x75316420] }
 0x238   : > { %1021 = vst [vmem:[#allocation1 + $0x10] ss:$2 sm:$0xff] %v1012_v21 }
 0x239   : > { %928 = vrot.lane.b32.xlu1 %v923_v14, %s1833_s2  ;;  %v969_v31 = vld.sshfl [vmem:[#allocation1 + $0x8] sm:$0xff pattern:$0x75316420]  ;;  %v968_v32 = vld.sshfl [vmem:[#allocation1] sm:$0xff pattern:$0x75316420] }
 0x23a   : > { %975 = vrot.lane.b32.xlu2 %v970_v25, %s1836_s21  ;;  %1019 = vst [vmem:[#allocation1] ss:$2 sm:$0xff] %v1011_v30  ;;  %v1203_v14 = vld [vmem:[%s2352_s9] sm:$0xf] }
 0x23b   : > { %v1273_v30 = vld [vmem:[%s2352_s9] sm:$0xf] }
 0x23f   : > { %v1024_v36 = vld.sshfl [vmem:[#allocation1 + $0x10] sm:$0xff pattern:$0x75316420] }
 0x240   : > { %1066 = vst [vmem:[#allocation1 + $0x10] ss:$2 sm:$0xff] %v1055_v33 }
 0x241   : > { %973 = vrot.lane.b32.xlu1 %v969_v31, %s1836_s21  ;;  %v1022_v39 = vld.sshfl [vmem:[#allocation1] sm:$0xff pattern:$0x75316420]  ;;  %v1023_v40 = vld.sshfl [vmem:[#allocation1 + $0x8] sm:$0xff pattern:$0x75316420] }
 0x242   : > { %1029 = vrot.lane.b32.xlu2 %v1024_v36, %s1832_s15  ;;  %1064 = vst [vmem:[#allocation1] ss:$2 sm:$0xff] %v1054_v37 }
 0x247   : > { %v1069_v44 = vld.sshfl [vmem:[#allocation1 + $0x10] sm:$0xff pattern:$0x75316420] }
 0x248   : > { %1111 = vst [vmem:[#allocation1 + $0x10] ss:$2 sm:$0xff] %v1100_v42 }
 0x249   : > { %971 = vrot.lane.b32.xlu1 %v968_v32, %s1836_s21  ;;  %v1068_v46 = vld.sshfl [vmem:[#allocation1 + $0x8] sm:$0xff pattern:$0x75316420]  ;;  %v1067_v48 = vld.sshfl [vmem:[#allocation1] sm:$0xff pattern:$0x75316420] }
 0x24a   : > { %1072 = vrot.lane.b32.xlu2 %v1068_v46, %s1831_s25  ;;  %1070 = vrot.lane.b32.xlu0 %v1067_v48, %s1831_s25  ;;  %1109 = vst [vmem:[#allocation1] ss:$2 sm:$0xff] %v1099_v45  ;;  %v992_v48 = vmul.f32 %v990_v58, %v2177_v49  ;;  %s1533_s21 = sshll.u32 %s1932_s29, 3  ;;  %s1405_s29 = scalar_lea.sflag [#allocation5], %s2007_s18 }
 0x24f   : > { %v1114_v50 = vld.sshfl [vmem:[#allocation1 + $0x10] sm:$0xff pattern:$0x75316420] }
 0x251   : > { %1027 = vrot.lane.b32.xlu1 %v1023_v40, %s1832_s15  ;;  %v1113_v52 = vld.sshfl [vmem:[#allocation1 + $0x8] sm:$0xff pattern:$0x75316420]  ;;  %v1112_v53 = vld.sshfl [vmem:[#allocation1] sm:$0xff pattern:$0x75316420] }
 0x252   : > { %1119 = vrot.lane.b32.xlu2 %v1114_v50, %s1834_s17  ;;  %1104 = vperm.xlu0 %1642, %v1101_v2   ;;  %1153 = vst [vmem:[#allocation1] ss:$2 sm:$0xff] %v1818_v1  ;;  %v1232_v1 = vld [vmem:[%s2352_s9] sm:$0xf] }
 0x259   : > { %1025 = vrot.lane.b32.xlu1 %v1022_v39, %s1832_s15  ;;  %v1156_v56 = vld.sshfl [vmem:[#allocation1] sm:$0xff pattern:$0x75316420] }
 0x25a   : > { %1132 = vperm.xlu2 %1643, %v1129_v51   ;;  %1644 = vset.pattern.permute.xlu0 %v1825_v28  ;;  %v1157_v28 = vld.sshfl [vmem:[#allocation1 + $0x8] sm:$0xff pattern:$0x75316420] }
 0x25b   : > { %1176 = vperm.xlu0 %1644, %v1173_v9  }
 0x261   : > { %1074 = vrot.lane.b32.xlu1 %v1069_v44, %s1831_s25 }
 0x262   : > { %1148 = vperm.xlu2 %1643, %v1145_v54  }
 0x263   : > { %1645 = vset.pattern.permute.xlu0 %v1817_v0 }
 0x264   : > { %1206 = vperm.xlu0 %1645, %v1203_v14  }
 0x269   : > { %1117 = vrot.lane.b32.xlu1 %v1113_v52, %s1834_s17 }
 0x26a   : > { %1646 = vset.pattern.permute.xlu2 %v1824_v26  ;;  %v914_v26 = vpop.permute.xlu0 %913 }
 0x26b   : > { %1235 = vperm.xlu2 %1646, %v1232_v1  }
 0x26c   : > { %1647 = vset.pattern.permute.xlu0 %v1826_v55 }
 0x26d   : > { %1245 = vperm.xlu0 %1647, %v1232_v1  }
 0x271   : > { %1115 = vrot.lane.b32.xlu1 %v1112_v53, %s1834_s17  ;;  %s1763_s17 = scalar_lea.hbm %s2356_s13, 16 }
 0x272   : > { %v961_v6 = vpop.permute.xlu0 %960 }
 0x273   : > { %1648 = vset.pattern.permute.xlu2 %v1837_v17 }
 0x274   : > { %1276 = vperm.xlu2 %1648, %v1273_v30  }
 0x275   : > { %1649 = vset.pattern.permute.xlu0 %v1838_v41 }
 0x279   : > { %1161 = vrot.lane.b32.xlu1 %v1157_v28, %s1828_s24 }
 0x27a   : > { %v1015_v8 = vpop.permute.xlu0 %1014 }
 0x27c   : > { %1650 = vset.pattern.permute.xlu2 %v1823_v24 }
 0x281   : > { %1159 = vrot.lane.b32.xlu1 %v1156_v56, %s1828_s24 }
 0x282   : > { %v884_v60 = vpop.permute.xlu2 %883 }
 0x28c   : > { %v925_v5 = vpop.permute.xlu2 %924 }
 0x294   : > { %v976_v17 = vpop.permute.xlu2 %975 }
 0x29b   : > { %v882_v61 = vpop.permute.xlu1 %881 }
 0x29c   : > { %v1030_v11 = vpop.permute.xlu2 %1029  ;;  %v887_v16 = vsel %vm885_vm14, %v882_v61, %v884_v60 }
 0x29d   : > { %v891_v23 = vmul.f32 %v887_v16, %v869_v57 }
 0x2a3   : > { %v880_v63 = vpop.permute.xlu1 %879 }
 0x2a4   : > { %v927_v12 = vpop.permute.xlu0 %926  ;;  %v886_v21 = vsel %vm885_vm14, %v880_v63, %v882_v61  ;;  %v1073_v25 = vpop.permute.xlu2 %1072 }
 0x2a5   : > { %v931_v20 = vsel %vm930_vm13, %v925_v5, %v927_v12  ;;  %v890_v32 = vmul.f32 %v886_v21, %v869_v57 }
 0x2a6   : > { %v935_v31 = vmul.f32 %v931_v20, %v914_v26 }
 0x2a8   : > { %v937_v59 = vadd.f32 %v935_v31, %v890_v32 }
 0x2ab   : > { %v929_v3 = vpop.permute.xlu1 %928 }
 0x2ac   : > { %v932_v15 = vsel %vm930_vm13, %v927_v12, %v929_v3  ;;  %v1120_v43 = vpop.permute.xlu2 %1119 }
 0x2ad   : > { %v936_v19 = vmul.f32 %v932_v15, %v914_v26 }
 0x2af   : > { %v938_v33 = vadd.f32 %v936_v19, %v891_v23  ;;  %v1303_v23 = vld [vmem:[%s2352_s9] sm:$0xf] }
 0x2b3   : > { %v974_v4 = vpop.permute.xlu1 %973 }
 0x2b4   : > { %v979_v18 = vsel %vm977_vm12, %v974_v4, %v976_v17  ;;  %v1133_v61 = vpop.permute.xlu2 %1132 }
 0x2b5   : > { %v983_v0 = vmul.f32 %v979_v18, %v961_v6  ;;  %v1272_v18 = vld [vmem:[#allocation2 + $0x10] sm:$0xf] }
 0x2b7   : > { %v985_v35 = vadd.f32 %v983_v0, %v938_v33 }
 0x2b9   : > { %v995_v44 = vadd.f32 %v993_v38, %v985_v35 }
 0x2bb   : > { %v972_v7 = vpop.permute.xlu1 %971 }
 0x2bc   : > { %v1071_v22 = vpop.permute.xlu0 %1070  ;;  %v978_v29 = vsel %vm977_vm12, %v972_v7, %v974_v4  ;;  %v1149_v32 = vpop.permute.xlu2 %1148 }
 0x2bd   : > { %v982_v36 = vmul.f32 %v978_v29, %v961_v6  ;;  %v1076_v54 = vsel %vm904_vm10, %v1071_v22, %v1073_v25  ;;  %v1331_v29 = vld [vmem:[%s2353_s10] sm:$0xf] }
 0x2be   : > { %v1080_v56 = vmul.f32 %v1076_v54, %v2231_v62 }
 0x2bf   : > { %v984_v42 = vadd.f32 %v982_v36, %v937_v59 }
 0x2c1   : > { %v994_v47 = vadd.f32 %v992_v48, %v984_v42 }
 0x2c3   : > { %v1028_v10 = vpop.permute.xlu1 %1027 }
 0x2c4   : > { %v1032_v34 = vsel %vm951_vm11, %v1028_v10, %v1030_v11  ;;  %v1105_v40 = vpop.permute.xlu0 %1104 }
 0x2c5   : > { %v1036_v39 = vmul.f32 %v1032_v34, %v1015_v8  ;;  %v1236_v33 = vpop.permute.xlu2 %1235 }
 0x2c7   : > { %v1038_v2 = vadd.f32 %v1036_v39, %v995_v44 }
 0x2cb   : > { %v1026_v13 = vpop.permute.xlu1 %1025 }
 0x2cc   : > { %v1031_v55 = vsel %vm951_vm11, %v1026_v13, %v1028_v10  ;;  %v1243_v13 = vld [vmem:[#allocation2 + $0x10] sm:$0xf] }
 0x2cd   : > { %v1035_v52 = vmul.f32 %v1031_v55, %v1015_v8  ;;  %v1177_v34 = vpop.permute.xlu0 %1176 }
 0x2ce   : > { %v1277_v35 = vpop.permute.xlu2 %1276 }
 0x2cf   : > { %v1037_v1 = vadd.f32 %v1035_v52, %v994_v47 }
 0x2d1   : > { %v1082_v63 = vadd.f32 %v1080_v56, %v1037_v1 }
 0x2d3   : > { %v1075_v27 = vpop.permute.xlu1 %1074 }
 0x2d4   : > { %v1077_v37 = vsel %vm904_vm10, %v1073_v25, %v1075_v27  ;;  %v1302_v25 = vld [vmem:[#allocation2 + $0x14] sm:$0xf] }
 0x2d5   : > { %v1081_v45 = vmul.f32 %v1077_v37, %v2231_v62 }
 0x2d6   : > { %v1207_v36 = vpop.permute.xlu0 %1206 }
 0x2d7   : > { %v1083_v51 = vadd.f32 %v1081_v45, %v1038_v2 }
 0x2db   : > { %v1118_v46 = vpop.permute.xlu1 %1117 }
 0x2dc   : > { %v1122_v50 = vsel %vm859_vm9, %v1118_v46, %v1120_v43 }
 0x2dd   : > { %v1126_v53 = vmul.f32 %v1122_v50, %v1105_v40 }
 0x2df   : > { %v1128_v28 = vadd.f32 %v1126_v53, %v1083_v51  ;;  %v1246_v59 = vpop.permute.xlu0 %1245 }
 0x2e1   : > { %v2262_v58 = vadd.f32 %v1133_v61, %v1128_v28 }
 0x2e3   : > { %v1116_v57 = vpop.permute.xlu1 %1115  ;;  %v1139_v41 = vrot.slane %v2262_v58, 4 }
 0x2e4   : > { %v1121_v49 = vsel %vm859_vm9, %v1116_v57, %v1118_v46 }
 0x2e5   : > { %v1125_v60 = vmul.f32 %v1121_v49, %v1105_v40  ;;  %v1340_v49 = vld [vmem:[%s2355_s12] sm:$0xf] }
 0x2e7   : > { %v1127_v3 = vadd.f32 %v1125_v60, %v1082_v63 }
 0x2e9   : > { %v2265_v26 = vadd.f32 %v1133_v61, %v1127_v3 }
 0x2eb   : > { %v1140_v4 = vsel %vm499_vm0, %v2265_v26, %v1139_v41  ;;  %v1238_v51 = vmul.f32 %v1236_v33, %v2265_v26 }
 0x2ec   : > { %1142 = vst [vmem:[#allocation2 + $0x8] sm:$0xff] %v1140_v4 }
 0x2f3   : > { %v1171_v5 = vld [vmem:[#allocation2 + $0x4] sm:$0xff]  ;;  %v1172_v62 = vld [vmem:[#allocation2 + $0xc] sm:$0xf] }
 0x2f4   : > { %v1144_v6 = vld [vmem:[#allocation2 + $0x8] sm:$0xf]  ;;  %1181 = vst [vmem:[#allocation1] ss:$2 sm:$0xff] %v1171_v5  ;;  %v1202_v9 = vld [vmem:[#allocation2 + $0xc] sm:$0xf] }
 0x2f5   : > { %1155 = vst [vmem:[#allocation1 + $0x10] ss:$2 sm:$0xff] %v1144_v6  ;;  %v1301_v19 = vld [vmem:[#allocation2 + $0xc] sm:$0xff] }
 0x2fb   : > { %v1185_v7 = vld.sshfl [vmem:[#allocation1 + $0x8] sm:$0xff pattern:$0x75316420]  ;;  %v1184_v17 = vld.sshfl [vmem:[#allocation1] sm:$0xff pattern:$0x75316420] }
 0x2fc   : > { %1189 = vrot.lane.b32.xlu0 %v1185_v7, %s1830_s14  ;;  %v1158_v8 = vld.sshfl [vmem:[#allocation1 + $0x10] sm:$0xff pattern:$0x75316420]  ;;  %1211 = vst [vmem:[#allocation1] ss:$2 sm:$0xff] %v1171_v5 }
 0x2fd   : > { %1163 = vrot.lane.b32.xlu2 %v1158_v8, %s1828_s24  ;;  %1183 = vst [vmem:[#allocation1 + $0x10] ss:$2 sm:$0xff] %v1172_v62  ;;  %s1840_s24 = smov 80  }
 0x303   : > { %v1214_v10 = vld.sshfl [vmem:[#allocation1] sm:$0xff pattern:$0x75316420]  ;;  %v1215_v11 = vld.sshfl [vmem:[#allocation1 + $0x8] sm:$0xff pattern:$0x75316420] }
 0x304   : > { %v1186_v12 = vld.sshfl [vmem:[#allocation1 + $0x10] sm:$0xff pattern:$0x75316420]  ;;  %1250 = vst [vmem:[#allocation1] ss:$2 sm:$0xff] %v1140_v4 }
 0x305   : > { %1187 = vrot.lane.b32.xlu2 %v1184_v17, %s1830_s14  ;;  %1191 = vrot.lane.b32.xlu1 %v1186_v12, %s1830_s14  ;;  %1213 = vst [vmem:[#allocation1 + $0x10] ss:$2 sm:$0xff] %v1202_v9  ;;  %v1239_v9 = vmul.f32 %v1236_v33, %v2262_v58  ;;  %v1339_v58 = vld [vmem:[%s2354_s11] sm:$0xf]  ;;  %s2380_s14 = sshll.u32 %s2007_s18, 3 }
 0x306   : > { %s487_s1 = scalar_lea.vmem [#allocation9], %s2380_s14 }
 0x30b   : > { %v1253_v14 = vld.sshfl [vmem:[#allocation1] sm:$0xff pattern:$0x75316420]  ;;  %v1254_v15 = vld.sshfl [vmem:[#allocation1 + $0x8] sm:$0xff pattern:$0x75316420] }
 0x30c   : > { %v1216_v16 = vld.sshfl [vmem:[#allocation1 + $0x10] sm:$0xff pattern:$0x75316420]  ;;  %1281 = vst [vmem:[#allocation1] ss:$2 sm:$0xff] %v1140_v4 }
 0x30d   : > { %1219 = vrot.lane.b32.xlu1 %v1215_v11, %s1839_s19  ;;  %1221 = vrot.lane.b32.xlu2 %v1216_v16, %s1839_s19  ;;  %1252 = vst [vmem:[#allocation1 + $0x10] ss:$2 sm:$0xff] %v1243_v13 }
 0x313   : > { %v1284_v20 = vld.sshfl [vmem:[#allocation1] sm:$0xff pattern:$0x75316420]  ;;  %v1285_v21 = vld.sshfl [vmem:[#allocation1 + $0x8] sm:$0xff pattern:$0x75316420] }
 0x314   : > { %1287 = vrot.lane.b32.xlu0 %v1284_v20, %s1827_s30  ;;  %v1255_v22 = vld.sshfl [vmem:[#allocation1 + $0x10] sm:$0xff pattern:$0x75316420]  ;;  %1311 = vst [vmem:[#allocation1] ss:$2 sm:$0xff] %v1301_v19 }
 0x315   : > { %1217 = vrot.lane.b32.xlu1 %v1214_v10, %s1839_s19  ;;  %1260 = vrot.lane.b32.xlu2 %v1255_v22, %s1840_s24  ;;  %1283 = vst [vmem:[#allocation1 + $0x10] ss:$2 sm:$0xff] %v1272_v18 }
 0x31b   : > { %v1315_v30 = vld.sshfl [vmem:[#allocation1 + $0x8] sm:$0xff pattern:$0x75316420]  ;;  %v1314_v31 = vld.sshfl [vmem:[#allocation1] sm:$0xff pattern:$0x75316420] }
 0x31c   : > { %v1286_v0 = vld.sshfl [vmem:[#allocation1 + $0x10] sm:$0xff pattern:$0x75316420]  ;;  %1306 = vperm.xlu0 %1649, %v1303_v23  }
 0x31d   : > { %1258 = vrot.lane.b32.xlu1 %v1254_v15, %s1840_s24  ;;  %1289 = vrot.lane.b32.xlu2 %v1285_v21, %s1827_s30  ;;  %1313 = vst [vmem:[#allocation1 + $0x10] ss:$2 sm:$0xff] %v1302_v25 }
 0x324   : > { %v1316_v27 = vld.sshfl [vmem:[#allocation1 + $0x10] sm:$0xff pattern:$0x75316420]  ;;  %1652 = vset.pattern.permute.xlu0 %v1823_v24  ;;  %v1162_v24 = vpop.permute.xlu1 %1161 }
 0x325   : > { %1256 = vrot.lane.b32.xlu1 %v1253_v14, %s1840_s24  ;;  %1321 = vrot.lane.b32.xlu2 %v1316_v27, %s2379_s20  ;;  %s1416_s24 = scalar_lea.hbm %s2356_s13, %s1533_s21 }
 0x326   : > { %s1420_s2 = sshll.u32 %s1416_s24, 4  ;;  %s1421_s2 = int_to_ptr.hbm [resolvable:$true] %s1420_s2 }
 0x327   : > { %s1757_s25 = sshra.s32 %s1421_s2, 4  ;;  %s1758_s25 = int_to_ptr.hbm [resolvable:$true] %s1757_s25 }
 0x328   : > { %p1764_p9 = scmp.lt.s32.totalorder %s1758_s25, %s2356_s13 }
 0x32c   : > { %v1160_v37 = vpop.permute.xlu1 %1159 }
 0x32d   : > { %1291 = vrot.lane.b32.xlu1 %v1286_v0, %s1827_s30  ;;  %1334 = vperm.xlu2 %1650, %v1331_v29   ;;  %v1165_v44 = vsel %vm755_vm5, %v1160_v37, %v1162_v24  ;;  %s1759_s30 = scalar_lea.hbm %s1758_s25, 8 }
 0x32e   : > { %v1169_v48 = vmul.f32 %v1165_v44, %v1149_v32  ;;  %p1760_p1 = scmp.ne.s32.totalorder %s1758_s25, %s1759_s30  ;;  %p1765_p2 = scmp.lt.s32.totalorder %s1763_s17, %s1759_s30 }
 0x330   : > { %p1761_p4 = pnand %p1760_p1, %p1977_p3  ;;  %p1766_p10 = por %p1765_p2, %p1764_p9 }
 0x332   : > { %p1762_p8 = pneg %p1761_p4 }
 0x334   : > { %p1767_p11 = pnand %p1766_p10, %p1762_p8 }
 0x335   : > { %1319 = vrot.lane.b32.xlu1 %v1315_v30, %s2379_s20 }
 0x33d   : > { %1317 = vrot.lane.b32.xlu1 %v1314_v31, %s2379_s20  ;;  %s1418_s20 = sshll.u32 %s487_s1, 4  ;;  %s1419_s20 = int_to_ptr.vmem [resolvable:$true] %s1418_s20 }
 0x345   : > { %1343 = vperm.xlu1 %1651, %v1340_v49  }
 0x357   : > { %v1164_v38 = vpop.permute.xlu2 %1163 }
 0x358   : > { %v1166_v63 = vsel %vm755_vm5, %v1162_v24, %v1164_v38 }
 0x359   : > { %v1170_v41 = vmul.f32 %v1166_v63, %v1149_v32 }
 0x35f   : > { %v1188_v55 = vpop.permute.xlu2 %1187 }
 0x367   : > { %v1222_v45 = vpop.permute.xlu2 %1221 }
 0x36e   : > { %v1190_v40 = vpop.permute.xlu0 %1189 }
 0x36f   : > { %v1193_v43 = vsel %vm825_vm8, %v1188_v55, %v1190_v40  ;;  %v1261_v1 = vpop.permute.xlu2 %1260  ;;  %v1396_v55 = vld [vmem:[%s2013_s27] sm:$0xff] }
 0x370   : > { %v1197_v46 = vmul.f32 %v1193_v43, %v1177_v34 }
 0x372   : > { %v1199_v52 = vadd.f32 %v1197_v46, %v1169_v48 }
 0x377   : > { %v1192_v39 = vpop.permute.xlu1 %1191  ;;  %v1290_v57 = vpop.permute.xlu2 %1289 }
 0x378   : > { %v1194_v61 = vsel %vm825_vm8, %v1190_v40, %v1192_v39 }
 0x379   : > { %v1198_v3 = vmul.f32 %v1194_v61, %v1177_v34 }
 0x37b   : > { %v1200_v5 = vadd.f32 %v1198_v3, %v1170_v41 }
 0x37f   : > { %v1220_v42 = vpop.permute.xlu1 %1219  ;;  %v1322_v7 = vpop.permute.xlu2 %1321 }
 0x380   : > { %v1225_v60 = vsel %vm1223_vm15, %v1220_v42, %v1222_v45 }
 0x381   : > { %v1229_v4 = vmul.f32 %v1225_v60, %v1207_v36 }
 0x383   : > { %v1231_v17 = vadd.f32 %v1229_v4, %v1200_v5 }
 0x385   : > { %v1241_v11 = vadd.f32 %v1239_v9, %v1231_v17 }
 0x386   : > { %v1288_v26 = vpop.permute.xlu0 %1287 }
 0x387   : > { %v1218_v50 = vpop.permute.xlu1 %1217  ;;  %v1335_v22 = vpop.permute.xlu2 %1334  ;;  %v1293_v25 = vsel %vm726_vm6, %v1288_v26, %v1290_v57 }
 0x388   : > { %v1224_v2 = vsel %vm1223_vm15, %v1218_v50, %v1220_v42  ;;  %v1297_v29 = vmul.f32 %v1293_v25, %v1277_v35 }
 0x389   : > { %v1228_v53 = vmul.f32 %v1224_v2, %v1207_v36 }
 0x38b   : > { %v1230_v47 = vadd.f32 %v1228_v53, %v1199_v52 }
 0x38d   : > { %v1240_v54 = vadd.f32 %v1238_v51, %v1230_v47 }
 0x38e   : > { %v1307_v14 = vpop.permute.xlu0 %1306 }
 0x38f   : > { %v1259_v28 = vpop.permute.xlu1 %1258 }
 0x390   : > { %v1264_v62 = vsel %vm1262_vm1, %v1259_v28, %v1261_v1 }
 0x391   : > { %v1268_v10 = vmul.f32 %v1264_v62, %v1246_v59 }
 0x393   : > { %v1270_v15 = vadd.f32 %v1268_v10, %v1241_v11 }
 0x397   : > { %v1257_v56 = vpop.permute.xlu1 %1256 }
 0x398   : > { %v1263_v13 = vsel %vm1262_vm1, %v1257_v56, %v1259_v28 }
 0x399   : > { %v1267_v19 = vmul.f32 %v1263_v13, %v1246_v59 }
 0x39b   : > { %v1269_v0 = vadd.f32 %v1267_v19, %v1240_v54 }
 0x39d   : > { %v1299_v33 = vadd.f32 %v1297_v29, %v1269_v0 }
 0x39f   : > { %v1292_v6 = vpop.permute.xlu1 %1291 }
 0x3a0   : > { %v1294_v8 = vsel %vm726_vm6, %v1290_v57, %v1292_v6 }
 0x3a1   : > { %v1298_v12 = vmul.f32 %v1294_v8, %v1277_v35 }
 0x3a3   : > { %v1300_v21 = vadd.f32 %v1298_v12, %v1270_v15 }
 0x3a7   : > { %v1320_v16 = vpop.permute.xlu1 %1319 }
 0x3a8   : > { %v1324_v18 = vsel %vm794_vm7, %v1320_v16, %v1322_v7 }
 0x3a9   : > { %v1328_v20 = vmul.f32 %v1324_v18, %v1307_v14 }
 0x3ab   : > { %v1330_v23 = vadd.f32 %v1328_v20, %v1300_v21 }
 0x3ad   : > { %v1338_v27 = vadd.f32 %v1335_v22, %v1330_v23 }
 0x3af   : > { %1525 = vmatpush.msk.msra.mxu1 %vm499_vm0, %v1338_v27  ;;  %v1318_v30 = vpop.permute.xlu1 %1317 }
 0x3b0   : > { %v1323_v31 = vsel %vm794_vm7, %v1318_v30, %v1320_v16  ;;  %1526 = vmatmul.msk.f32.vlgmr.msra.gmra.mxu1 %vm1346_vm2, %v1339_v58 }
 0x3b1   : > { %v1327_v32 = vmul.f32 %v1323_v31, %v1307_v14 }
 0x3b3   : > { %v1329_v34 = vadd.f32 %v1327_v32, %v1299_v33 }
 0x3b5   : > { %v1337_v24 = vadd.f32 %v1335_v22, %v1329_v34 }
 0x3b7   : > { %1523 = vmatpush.msk.msra.mxu0 %vm499_vm0, %v1337_v24  ;;  %v1344_v37 = vpop.permute.xlu1 %1343 }
 0x3b8   : > { %1524 = vmatmul.msk.f32.vlgmr.msra.gmra.mxu0 %vm1346_vm2, %v1339_v58 }
 0x42d   : > { %v1393_v36 = vpop.f32.mrf.mxu1 }
 0x42e   : > { %v1394_v38 = vadd.f32 %v1393_v36, %v1344_v37 }
 0x430   : > { %v1399_v35 = vrot.slane %v1394_v38, 4 }
 0x435   : > { %v1373_v59 = vpop.f32.mrf.mxu0 }
 0x436   : > { %v1374_v39 = vadd.f32 %v1373_v59, %v1344_v37 }
 0x438   : > { %v1400_v40 = vsel %vm499_vm0, %v1374_v39, %v1399_v35 }
 0x439   : > { %v1402_v42 = vmul.f32 %v1400_v40, %v1396_v55 }
 0x43b   : > { %1403 = vst [vmem:[%s487_s1] sm:$0xff] %v1402_v42 }
 0x43c   : > { %1770 = shalt.err (!%p1767_p11)
}
 0x43d   : > { %1544 = dma.vmem_to_hbm [thread:$0]  (%p1977_p3), %s1419_s20, 128, %s1421_s2, %s1405_s29  }
 0x43e PF: > { %s2381_s18 = sld [smem:[#allocation13_spill]]  ;;  %p2383_p12 = scmp.ge.s32.totalorder %s1813_s28, 2 }
 0x440   : > { %p1558_p13 = pnand %p2383_p12, %p1946_p6 }
 0x442   : > { %p1559_p0 = pneg %p1558_p13 }
 0x444   : > { %s1432_s19 = sand.u32 1, %s2381_s18  }
 0x445   : > { %s1433_s24 = scalar_lea.sflag [#allocation5], %s1432_s19 }
 0x446   : > { %1796 = dma.done.wait (%p1559_p0), %s1433_s24, 128  }
 0x447   : > { %1798 = vsyncadd (%p1559_p0), %s1433_s24, 4294967168  ;;  %s2384_s28 = sld [smem:[#allocation16_spill]]  ;;  %s2387_s25 = smov %s1805_s26 }
 0x448   : > { %s2385_s14 = sld [smem:[#allocation14_spill]] }
 0x449   : > { %s2386_s27 = sld [smem:[#allocation17_spill]] }
 0x44d   : > { %p27_p5 = scmp.ge.s32.totalorder %s2384_s28, 4  }
 0x44e   : > { %s2388_s26 = smov %s2385_s14 }
 0x44f   :  { %29 = sbr.rel (!%p27_p5) target bundleno = 9 (0x9), region = 153 }
 0x454   :  { %1439 = vsyncpa [#allocation4], 1 }
 0x455   :  { %1441 = vsyncpa [#allocation4 + $0x1], 1 }
 0x456   :  { %1442 = vsyncpa [#allocation7], 1 }
 0x457   :  { %1443 = vsyncpa [#allocation5], 1 }
 0x458   :  { %1445 = vsyncpa [#allocation5 + $0x1], 1 }

</bundles_post_ra>
